<compile_context>
chip_gen: v6e
topology: v6e:2x2x1
jax: 0.10.0
libtpu: 0.0.40
codegen_flags: <defaults>
</compile_context>

<pallas_src>
import functools
import math

import jax
import jax.numpy as jnp
from jax.experimental import pallas as pl
from jax.experimental.pallas import tpu as pltpu


# ------------------------------ fused Pallas kernel --------------------------

def _tri_fused_kernel(x1_ref, x2_ref, x3_ref,
                      img1_ref, img2_ref, img3_ref,
                      s0_ref, d0_ref, s1_ref, d1_ref, srgb_ref,
                      w0_ref, w1_ref, wrgb_ref,
                      b0_ref, b1_ref, brgb_ref,
                      n0_ref, n1_ref,
                      xo1_ref, xo2_ref, xo3_ref,
                      io1_ref, io2_ref, io3_ref,
                      src0, slab0, src1, slab1,
                      *, H, W, G, act_gain):
    # x*_ref   : (1, Cin, HW)  f32   one sample of one stream, flat NCHW
    # img*_ref : (1, Cimg, HW) f32   running image (aliased with io*_ref)
    # s0/d0/s1/d1/srgb : (1, C, 3)   f32  per-sample styles / demod, stream on lanes
    # w0_ref   : (Cout, 9*Cin)  bf16 tap-major im2col weights (t = ky*3 + kx)
    # w1_ref   : (Cout, 9*Cout) bf16
    # wrgb_ref : (Cimg, Cout)   bf16
    # b*       : (C, 1) f32 ; n* : (1, HW) f32 const-noise * strength
    # src0/src1: (C, 3*HW + 2*G) f32 scratch — modulated 3-stream source, chunk s at G + s*HW
    # slab0/1  : (9*C, 3*HW)     f32 scratch — shifted+masked im2col slab
    HW = H * W
    NQ = 3 * HW

    x_refs = (x1_ref, x2_ref, x3_ref)
    img_refs = (img1_ref, img2_ref, img3_ref)
    xo_refs = (xo1_ref, xo2_ref, xo3_ref)
    io_refs = (io1_ref, io2_ref, io3_ref)

    # Row / column validity masks over the (1, 3*HW) output lanes (3 streams side by side).
    # They also neutralize any cross-stream / end-pad reads, so scratch needs no zero-fill.
    q = jax.lax.broadcasted_iota(jnp.int32, (1, NQ), 1)
    col = q % W
    pix = q % HW
    mask_l = col >= 1           # tap dx == -1 invalid at col 0
    mask_r = col < (W - 1)      # tap dx == +1 invalid at col W-1
    mask_t = pix >= W           # tap dy == -1 invalid at row 0
    mask_b = pix < (HW - W)     # tap dy == +1 invalid at row H-1

    def conv3x3(src_ref, slab_ref, w_ref):
        # src_ref holds the modulated, zero-boundary-free 3-stream source; build the
        # tap-major im2col slab with 9 shifted+masked slices, then ONE bf16 MXU dot.
        c = src_ref.shape[0]
        for t in range(9):
            dy, dx = t // 3 - 1, t % 3 - 1
            off = G + dy * W + dx
            xs = src_ref[:, off:off + NQ]          # static (unaligned) lane-slice load
            m = None
            if dy == -1:
                m = mask_t
            elif dy == 1:
                m = mask_b
            if dx == -1:
                m = mask_l if m is None else (m & mask_l)
            elif dx == 1:
                m = mask_r if m is None else (m & mask_r)
            if m is not None:
                xs = jnp.where(m, xs, 0.0)
            slab_ref[t * c:(t + 1) * c, :] = xs    # aligned store into the im2col slab
        return jnp.dot(w_ref[...], slab_ref[...].astype(jnp.bfloat16),
                       preferred_element_type=jnp.float32)   # (Cout, 3*HW) f32

    def lrelu(y):
        return jnp.where(y >= 0.0, y, 0.2 * y) * act_gain

    s0v = s0_ref[0]          # (Cin, 3)
    d0v = d0_ref[0]          # (Cout, 3)
    s1v = s1_ref[0]
    d1v = d1_ref[0]
    srgbv = srgb_ref[0]

    # ---- conv0: per-stream modulation -> staged 3-stream source -> one K=9*Cin dot ----
    for s in range(3):
        src0[:, G + s * HW:G + (s + 1) * HW] = x_refs[s][0] * s0v[:, s:s + 1]
    y0 = conv3x3(src0, slab0, w0_ref)

    # ---- conv0 epilogue (demod + noise + bias + lrelu) + conv1 source staging ----
    for s in range(3):
        y = y0[:, s * HW:(s + 1) * HW] * d0v[:, s:s + 1]
        y = lrelu(y + n0_ref[...] + b0_ref[...])
        src1[:, G + s * HW:G + (s + 1) * HW] = y * s1v[:, s:s + 1]

    # ---- conv1: one K=9*Cout dot ----
    y1 = conv3x3(src1, slab1, w1_ref)

    # ---- conv1 epilogue + torgb (1x1 modulated conv, no demod) + in-place img add ----
    for s in range(3):
        y = y1[:, s * HW:(s + 1) * HW] * d1v[:, s:s + 1]
        y = lrelu(y + n1_ref[...] + b1_ref[...])
        xo_refs[s][0] = y
        rgb = jnp.dot(wrgb_ref[...], (y * srgbv[:, s:s + 1]).astype(jnp.bfloat16),
                      preferred_element_type=jnp.float32)
        io_refs[s][0] = img_refs[s][0] + rgb + brgb_ref[...]


# ------------------------------ wrapper ---------------------------------------

def _affine(w, A, b):
    # FullyConnectedLayer: x @ (weight / sqrt(in_features)).T + bias
    return (w @ A.T) * (1.0 / math.sqrt(A.shape[1])) + b


@jax.jit
def tri_block_forward(params, x1, x2, x3, img1, img2, img3, ws1, ws2, ws3):
    """TriOptionalUpSynthesisBlock.forward (skip arch, is_up=False, fp32, const noise)."""
    p = params
    B, Cin, H, W = x1.shape
    Cout = p['conv0']['weight'].shape[0]
    Cimg = p['torgb']['weight'].shape[0]
    HW = H * W
    # End-slack of the in-kernel source slab.  Needs >= W+1 for in-bounds tap slices; a
    # multiple of 128 keeps the in-kernel chunk stores lane-aligned (HW % 128 == 0 here).
    # It does NOT inflate any DMA: x is DMA'd unpadded and staged/padded inside the kernel.
    G = pl.cdiv(W + 1, 128) * 128
    assert G >= W + 1
    L = 3 * HW + 2 * G

    xs = [x.astype(jnp.float32).reshape(B, Cin, HW) for x in (x1, x2, x3)]
    imgs = [im.astype(jnp.float32).reshape(B, Cimg, HW) for im in (img1, img2, img3)]
    wss = (ws1, ws2, ws3)

    # Per-stream, per-sample styles / demod coefficients (tiny plain-JAX glue).
    w0 = p['conv0']['weight']
    w1 = p['conv1']['weight']
    s0l, d0l, s1l, d1l, srgbl = [], [], [], [], []
    for s in range(3):
        st0 = _affine(wss[s][:, 0], p['conv0']['affine_w'], p['conv0']['affine_b'])  # (B,Cin)
        st1 = _affine(wss[s][:, 1], p['conv1']['affine_w'], p['conv1']['affine_b'])  # (B,Cout)
        strgb = (_affine(wss[s][:, 2], p['torgb']['affine_w'], p['torgb']['affine_b'])
                 * (1.0 / math.sqrt(Cout)))                                          # (B,Cout)
        d0 = jax.lax.rsqrt(jnp.sum((w0[None] * st0[:, None, :, None, None]) ** 2,
                                   axis=(2, 3, 4)) + 1e-8)                           # (B,Cout)
        d1 = jax.lax.rsqrt(jnp.sum((w1[None] * st1[:, None, :, None, None]) ** 2,
                                   axis=(2, 3, 4)) + 1e-8)
        s0l.append(st0); d0l.append(d0); s1l.append(st1); d1l.append(d1); srgbl.append(strgb)
    s0 = jnp.stack(s0l, axis=-1)     # (B, Cin, 3)   stream index on lanes
    d0 = jnp.stack(d0l, axis=-1)     # (B, Cout, 3)
    s1 = jnp.stack(s1l, axis=-1)
    d1 = jnp.stack(d1l, axis=-1)
    srgb = jnp.stack(srgbl, axis=-1)

    # Conv weights as (Cout, 9*C) with K ordered tap-major (t = ky*3 + kx), bf16 for the MXU.
    w0_2d = jnp.transpose(w0, (0, 2, 3, 1)).reshape(Cout, 9 * Cin).astype(jnp.bfloat16)
    w1_2d = jnp.transpose(w1, (0, 2, 3, 1)).reshape(Cout, 9 * Cout).astype(jnp.bfloat16)
    wrgb = p['torgb']['weight'].astype(jnp.bfloat16)                                 # (Cimg,Cout)

    b0 = p['conv0']['bias'].reshape(Cout, 1)
    b1 = p['conv1']['bias'].reshape(Cout, 1)
    brgb = p['torgb']['bias'].reshape(Cimg, 1)
    n0 = (p['conv0']['noise_const'] * p['conv0']['noise_strength']).reshape(1, HW)
    n1 = (p['conv1']['noise_const'] * p['conv1']['noise_strength']).reshape(1, HW)

    kernel = functools.partial(_tri_fused_kernel, H=H, W=W, G=G, act_gain=math.sqrt(2.0))

    xspec = pl.BlockSpec((1, Cin, HW), lambda b: (b, 0, 0))
    imspec = pl.BlockSpec((1, Cimg, HW), lambda b: (b, 0, 0))
    xospec = pl.BlockSpec((1, Cout, HW), lambda b: (b, 0, 0))

    outs = pl.pallas_call(
        kernel,
        out_shape=(jax.ShapeDtypeStruct((B, Cout, HW), jnp.float32),
                   jax.ShapeDtypeStruct((B, Cout, HW), jnp.float32),
                   jax.ShapeDtypeStruct((B, Cout, HW), jnp.float32),
                   jax.ShapeDtypeStruct((B, Cimg, HW), jnp.float32),
                   jax.ShapeDtypeStruct((B, Cimg, HW), jnp.float32),
                   jax.ShapeDtypeStruct((B, Cimg, HW), jnp.float32)),
        grid=(B,),
        in_specs=[
            xspec, xspec, xspec,                                   # x1, x2, x3
            imspec, imspec, imspec,                                # img1, img2, img3
            pl.BlockSpec((1, Cin, 3), lambda b: (b, 0, 0)),        # s0
            pl.BlockSpec((1, Cout, 3), lambda b: (b, 0, 0)),       # d0
            pl.BlockSpec((1, Cout, 3), lambda b: (b, 0, 0)),       # s1
            pl.BlockSpec((1, Cout, 3), lambda b: (b, 0, 0)),       # d1
            pl.BlockSpec((1, Cout, 3), lambda b: (b, 0, 0)),       # srgb
            pl.BlockSpec((Cout, 9 * Cin), lambda b: (0, 0)),       # conv0 im2col weight
            pl.BlockSpec((Cout, 9 * Cout), lambda b: (0, 0)),      # conv1 im2col weight
            pl.BlockSpec((Cimg, Cout), lambda b: (0, 0)),          # torgb weight
            pl.BlockSpec((Cout, 1), lambda b: (0, 0)),             # bias conv0
            pl.BlockSpec((Cout, 1), lambda b: (0, 0)),             # bias conv1
            pl.BlockSpec((Cimg, 1), lambda b: (0, 0)),             # bias torgb
            pl.BlockSpec((1, HW), lambda b: (0, 0)),               # noise conv0
            pl.BlockSpec((1, HW), lambda b: (0, 0)),               # noise conv1
        ],
        out_specs=(xospec, xospec, xospec, imspec, imspec, imspec),
        scratch_shapes=[pltpu.VMEM((Cin, L), jnp.float32),         # conv0 source slab
                        pltpu.VMEM((9 * Cin, 3 * HW), jnp.float32),  # conv0 im2col slab
                        pltpu.VMEM((Cout, L), jnp.float32),        # conv1 source slab
                        pltpu.VMEM((9 * Cout, 3 * HW), jnp.float32)],  # conv1 im2col slab
        input_output_aliases={3: 3, 4: 4, 5: 5},                   # img accumulates in place
        compiler_params=pltpu.CompilerParams(dimension_semantics=("parallel",)),
    )(xs[0], xs[1], xs[2], imgs[0], imgs[1], imgs[2],
      s0, d0, s1, d1, srgb, w0_2d, w1_2d, wrgb, b0, b1, brgb, n0, n1)

    x1o, x2o, x3o, i1o, i2o, i3o = outs
    return (x1o.reshape(B, Cout, H, W), x2o.reshape(B, Cout, H, W),
            x3o.reshape(B, Cout, H, W), i1o.reshape(B, Cimg, H, W),
            i2o.reshape(B, Cimg, H, W), i3o.reshape(B, Cimg, H, W))


# ------------------------------ pure-JAX reference ----------------------------

def _ref_modconv(x_nchw, weight, styles, noise2d, bias, act_gain):
    wmod = weight[None] * styles[:, None, :, None, None]
    d = jax.lax.rsqrt(jnp.sum(wmod * wmod, axis=(2, 3, 4)) + 1e-8)
    xm = x_nchw * styles[:, :, None, None]
    y = jax.lax.conv_general_dilated(xm, weight, (1, 1), ((1, 1), (1, 1)),
                                     dimension_numbers=('NCHW', 'OIHW', 'NCHW'))
    y = y * d[:, :, None, None] + noise2d[None, None]
    y = y + bias[None, :, None, None]
    return jnp.where(y >= 0, y, 0.2 * y) * act_gain


def _ref_stream(p, x, img, ws):
    s0 = _affine(ws[:, 0], p['conv0']['affine_w'], p['conv0']['affine_b'])
    x = _ref_modconv(x, p['conv0']['weight'], s0,
                     p['conv0']['noise_const'] * p['conv0']['noise_strength'],
                     p['conv0']['bias'], math.sqrt(2.0))
    s1 = _affine(ws[:, 1], p['conv1']['affine_w'], p['conv1']['affine_b'])
    x = _ref_modconv(x, p['conv1']['weight'], s1,
                     p['conv1']['noise_const'] * p['conv1']['noise_strength'],
                     p['conv1']['bias'], math.sqrt(2.0))
    s2 = (_affine(ws[:, 2], p['torgb']['affine_w'], p['torgb']['affine_b'])
          * (1.0 / math.sqrt(p['torgb']['weight'].shape[1])))
    y = jnp.einsum('bchw,dc->bdhw', x * s2[:, :, None, None], p['torgb']['weight'])
    y = y + p['torgb']['bias'][None, :, None, None]
    return x, img + y


# ------------------------------ main -------------------------------------------

if __name__ == "__main__":
    B, Cin, Cout, w_dim, res, img_ch = 2, 4, 8, 32, 16, 3
    ks = jax.random.split(jax.random.PRNGKey(0), 20)
    params = {
        'conv0': {
            'weight': jax.random.normal(ks[0], (Cout, Cin, 3, 3), jnp.float32),
            'affine_w': jax.random.normal(ks[1], (Cin, w_dim), jnp.float32),
            'affine_b': jnp.ones((Cin,), jnp.float32),
            'bias': 0.1 * jax.random.normal(ks[2], (Cout,), jnp.float32),
            'noise_const': jax.random.normal(ks[3], (res, res), jnp.float32),
            'noise_strength': jnp.float32(0.1),
        },
        'conv1': {
            'weight': jax.random.normal(ks[4], (Cout, Cout, 3, 3), jnp.float32),
            'affine_w': jax.random.normal(ks[5], (Cout, w_dim), jnp.float32),
            'affine_b': jnp.ones((Cout,), jnp.float32),
            'bias': 0.1 * jax.random.normal(ks[6], (Cout,), jnp.float32),
            'noise_const': jax.random.normal(ks[7], (res, res), jnp.float32),
            'noise_strength': jnp.float32(0.1),
        },
        'torgb': {
            'weight': jax.random.normal(ks[8], (img_ch, Cout), jnp.float32),
            'affine_w': jax.random.normal(ks[9], (Cout, w_dim), jnp.float32),
            'affine_b': jnp.ones((Cout,), jnp.float32),
            'bias': 0.1 * jax.random.normal(ks[10], (img_ch,), jnp.float32),
        },
    }
    x1 = jax.random.normal(ks[11], (B, Cin, res, res), jnp.float32)
    x2 = jax.random.normal(ks[12], (B, Cin, res, res), jnp.float32)
    x3 = jax.random.normal(ks[13], (B, Cin, res, res), jnp.float32)
    img1 = jax.random.normal(ks[14], (B, img_ch, res, res), jnp.float32)
    img2 = jax.random.normal(ks[15], (B, img_ch, res, res), jnp.float32)
    img3 = jax.random.normal(ks[16], (B, img_ch, res, res), jnp.float32)
    ws1 = jax.random.normal(ks[17], (B, 3, w_dim), jnp.float32)
    ws2 = jax.random.normal(ks[18], (B, 3, w_dim), jnp.float32)
    ws3 = jax.random.normal(ks[19], (B, 3, w_dim), jnp.float32)

    outs = jax.block_until_ready(
        tri_block_forward(params, x1, x2, x3, img1, img2, img3, ws1, ws2, ws3))

    # bf16 MXU operands (f32 accumulation / epilogue) -> relaxed tolerance vs f32 reference.
    for x, img, ws, ox, oimg in zip((x1, x2, x3), (img1, img2, img3),
                                    (ws1, ws2, ws3), outs[:3], outs[3:]):
        rx, rimg = _ref_stream(params, x, img, ws)
        assert jnp.allclose(ox, rx, atol=5e-2, rtol=5e-2), "feature mismatch"
        assert jnp.allclose(oimg, rimg, atol=5e-2, rtol=5e-2), "img mismatch"

    print("KERNEL_OK")
</pallas_src>

<mosaic_0001>
module attributes {stable_mosaic.version = 11 : i64} {
  func.func @_tri_fused_kernel(%arg0: i32, %arg1: memref<1x4x256xf32, #tpu.memory_space<vmem>>, %arg2: memref<1x4x256xf32, #tpu.memory_space<vmem>>, %arg3: memref<1x4x256xf32, #tpu.memory_space<vmem>>, %arg4: memref<1x3x256xf32, #tpu.memory_space<vmem>>, %arg5: memref<1x3x256xf32, #tpu.memory_space<vmem>>, %arg6: memref<1x3x256xf32, #tpu.memory_space<vmem>>, %arg7: memref<1x4x3xf32, #tpu.memory_space<vmem>>, %arg8: memref<1x8x3xf32, #tpu.memory_space<vmem>>, %arg9: memref<1x8x3xf32, #tpu.memory_space<vmem>>, %arg10: memref<1x8x3xf32, #tpu.memory_space<vmem>>, %arg11: memref<1x8x3xf32, #tpu.memory_space<vmem>>, %arg12: memref<8x36xbf16, #tpu.memory_space<vmem>>, %arg13: memref<8x72xbf16, #tpu.memory_space<vmem>>, %arg14: memref<3x8xbf16, #tpu.memory_space<vmem>>, %arg15: memref<8x1xf32, #tpu.memory_space<vmem>>, %arg16: memref<8x1xf32, #tpu.memory_space<vmem>>, %arg17: memref<3x1xf32, #tpu.memory_space<vmem>>, %arg18: memref<1x256xf32, #tpu.memory_space<vmem>>, %arg19: memref<1x256xf32, #tpu.memory_space<vmem>>, %arg20: memref<1x8x256xf32, #tpu.memory_space<vmem>>, %arg21: memref<1x8x256xf32, #tpu.memory_space<vmem>>, %arg22: memref<1x8x256xf32, #tpu.memory_space<vmem>>, %arg23: memref<1x3x256xf32, #tpu.memory_space<vmem>>, %arg24: memref<1x3x256xf32, #tpu.memory_space<vmem>>, %arg25: memref<1x3x256xf32, #tpu.memory_space<vmem>>, %arg26: memref<4x1024xf32, #tpu.memory_space<vmem>>, %arg27: memref<36x768xf32, #tpu.memory_space<vmem>>, %arg28: memref<8x1024xf32, #tpu.memory_space<vmem>>, %arg29: memref<72x768xf32, #tpu.memory_space<vmem>>) attributes {dimension_semantics = [#tpu.dimension_semantics<parallel>], iteration_bounds = array<i64: 2>, scalar_prefetch = 0 : i64, scratch_operands = 4 : i64, tpu.core_type = #tpu.core_type<tc>, window_params = [{transform_indices = @transform_0, window_bounds = array<i64: 1, 4, 256>}, {transform_indices = @transform_1, window_bounds = array<i64: 1, 4, 256>}, {transform_indices = @transform_2, window_bounds = array<i64: 1, 4, 256>}, {transform_indices = @transform_3, window_bounds = array<i64: 1, 3, 256>}, {transform_indices = @transform_4, window_bounds = array<i64: 1, 3, 256>}, {transform_indices = @transform_5, window_bounds = array<i64: 1, 3, 256>}, {transform_indices = @transform_6, window_bounds = array<i64: 1, 4, 3>}, {transform_indices = @transform_7, window_bounds = array<i64: 1, 8, 3>}, {transform_indices = @transform_8, window_bounds = array<i64: 1, 8, 3>}, {transform_indices = @transform_9, window_bounds = array<i64: 1, 8, 3>}, {transform_indices = @transform_10, window_bounds = array<i64: 1, 8, 3>}, {pipeline_mode = #tpu.pipeline_mode<synchronous>, transform_indices = @transform_11, window_bounds = array<i64: 8, 36>}, {pipeline_mode = #tpu.pipeline_mode<synchronous>, transform_indices = @transform_12, window_bounds = array<i64: 8, 72>}, {pipeline_mode = #tpu.pipeline_mode<synchronous>, transform_indices = @transform_13, window_bounds = array<i64: 3, 8>}, {pipeline_mode = #tpu.pipeline_mode<synchronous>, transform_indices = @transform_14, window_bounds = array<i64: 8, 1>}, {pipeline_mode = #tpu.pipeline_mode<synchronous>, transform_indices = @transform_15, window_bounds = array<i64: 8, 1>}, {pipeline_mode = #tpu.pipeline_mode<synchronous>, transform_indices = @transform_16, window_bounds = array<i64: 3, 1>}, {pipeline_mode = #tpu.pipeline_mode<synchronous>, transform_indices = @transform_17, window_bounds = array<i64: 1, 256>}, {pipeline_mode = #tpu.pipeline_mode<synchronous>, transform_indices = @transform_18, window_bounds = array<i64: 1, 256>}, {transform_indices = @transform_19, window_bounds = array<i64: 1, 8, 256>}, {transform_indices = @transform_20, window_bounds = array<i64: 1, 8, 256>}, {transform_indices = @transform_21, window_bounds = array<i64: 1, 8, 256>}, {transform_indices = @transform_22, window_bounds = array<i64: 1, 3, 256>}, {transform_indices = @transform_23, window_bounds = array<i64: 1, 3, 256>}, {transform_indices = @transform_24, window_bounds = array<i64: 1, 3, 256>}]} {
    %0 = tpu.iota {dimensions = array<i32: 1>} : vector<1x768xi32>
    %c16_i32 = arith.constant 16 : i32
    %c0_i32 = arith.constant 0 : i32
    %1 = arith.cmpi eq, %c16_i32, %c0_i32 : i32
    %c1_i32 = arith.constant 1 : i32
    %2 = arith.select %1, %c1_i32, %c16_i32 : i32
    %3 = vector.broadcast %2 : i32 to vector<1x768xi32>
    %4 = arith.remsi %0, %3 : vector<1x768xi32>
    %c0_i32_0 = arith.constant 0 : i32
    %5 = vector.broadcast %c0_i32_0 : i32 to vector<1x768xi32>
    %6 = arith.cmpi ne, %4, %5 : vector<1x768xi32>
    %c0_i32_1 = arith.constant 0 : i32
    %7 = vector.broadcast %c0_i32_1 : i32 to vector<1x768xi32>
    %8 = arith.cmpi slt, %4, %7 : vector<1x768xi32>
    %c0_i32_2 = arith.constant 0 : i32
    %9 = arith.cmpi slt, %2, %c0_i32_2 : i32
    %10 = vector.broadcast %9 : i1 to vector<1x768xi1>
    %11 = vector.broadcast %10 : vector<1x768xi1> to vector<1x768xi1>
    %12 = arith.xori %8, %11 : vector<1x768xi1>
    %13 = arith.andi %12, %6 : vector<1x768xi1>
    %14 = vector.broadcast %2 : i32 to vector<1x768xi32>
    %15 = arith.addi %4, %14 : vector<1x768xi32>
    %16 = arith.select %13, %15, %4 : vector<1x768xi1>, vector<1x768xi32>
    %c256_i32 = arith.constant 256 : i32
    %c0_i32_3 = arith.constant 0 : i32
    %17 = arith.cmpi eq, %c256_i32, %c0_i32_3 : i32
    %c1_i32_4 = arith.constant 1 : i32
    %18 = arith.select %17, %c1_i32_4, %c256_i32 : i32
    %19 = vector.broadcast %18 : i32 to vector<1x768xi32>
    %20 = arith.remsi %0, %19 : vector<1x768xi32>
    %c0_i32_5 = arith.constant 0 : i32
    %21 = vector.broadcast %c0_i32_5 : i32 to vector<1x768xi32>
    %22 = arith.cmpi ne, %20, %21 : vector<1x768xi32>
    %c0_i32_6 = arith.constant 0 : i32
    %23 = vector.broadcast %c0_i32_6 : i32 to vector<1x768xi32>
    %24 = arith.cmpi slt, %20, %23 : vector<1x768xi32>
    %c0_i32_7 = arith.constant 0 : i32
    %25 = arith.cmpi slt, %18, %c0_i32_7 : i32
    %26 = vector.broadcast %25 : i1 to vector<1x768xi1>
    %27 = vector.broadcast %26 : vector<1x768xi1> to vector<1x768xi1>
    %28 = arith.xori %24, %27 : vector<1x768xi1>
    %29 = arith.andi %28, %22 : vector<1x768xi1>
    %30 = vector.broadcast %18 : i32 to vector<1x768xi32>
    %31 = arith.addi %20, %30 : vector<1x768xi32>
    %32 = arith.select %29, %31, %20 : vector<1x768xi1>, vector<1x768xi32>
    %c1_i32_8 = arith.constant 1 : i32
    %33 = vector.broadcast %c1_i32_8 : i32 to vector<1x768xi32>
    %34 = arith.cmpi sge, %16, %33 : vector<1x768xi32>
    %c15_i32 = arith.constant 15 : i32
    %35 = vector.broadcast %c15_i32 : i32 to vector<1x768xi32>
    %36 = arith.cmpi slt, %16, %35 : vector<1x768xi32>
    %c16_i32_9 = arith.constant 16 : i32
    %37 = vector.broadcast %c16_i32_9 : i32 to vector<1x768xi32>
    %38 = arith.cmpi sge, %32, %37 : vector<1x768xi32>
    %c240_i32 = arith.constant 240 : i32
    %39 = vector.broadcast %c240_i32 : i32 to vector<1x768xi32>
    %40 = arith.cmpi slt, %32, %39 : vector<1x768xi32>
    %c0 = arith.constant 0 : index
    %c0_10 = arith.constant 0 : index
    %c0_11 = arith.constant 0 : index
    %41 = vector.load %arg7[%c0, %c0_10, %c0_11] : memref<1x4x3xf32, #tpu.memory_space<vmem>>, vector<1x4x3xf32>
    %42 = vector.shape_cast %41 : vector<1x4x3xf32> to vector<4x3xf32>
    %c0_12 = arith.constant 0 : index
    %c0_13 = arith.constant 0 : index
    %c0_14 = arith.constant 0 : index
    %43 = vector.load %arg8[%c0_12, %c0_13, %c0_14] : memref<1x8x3xf32, #tpu.memory_space<vmem>>, vector<1x8x3xf32>
    %44 = vector.shape_cast %43 : vector<1x8x3xf32> to vector<8x3xf32>
    %c0_15 = arith.constant 0 : index
    %c0_16 = arith.constant 0 : index
    %c0_17 = arith.constant 0 : index
    %45 = vector.load %arg9[%c0_15, %c0_16, %c0_17] : memref<1x8x3xf32, #tpu.memory_space<vmem>>, vector<1x8x3xf32>
    %46 = vector.shape_cast %45 : vector<1x8x3xf32> to vector<8x3xf32>
    %c0_18 = arith.constant 0 : index
    %c0_19 = arith.constant 0 : index
    %c0_20 = arith.constant 0 : index
    %47 = vector.load %arg10[%c0_18, %c0_19, %c0_20] : memref<1x8x3xf32, #tpu.memory_space<vmem>>, vector<1x8x3xf32>
    %48 = vector.shape_cast %47 : vector<1x8x3xf32> to vector<8x3xf32>
    %c0_21 = arith.constant 0 : index
    %c0_22 = arith.constant 0 : index
    %c0_23 = arith.constant 0 : index
    %49 = vector.load %arg11[%c0_21, %c0_22, %c0_23] : memref<1x8x3xf32, #tpu.memory_space<vmem>>, vector<1x8x3xf32>
    %50 = vector.shape_cast %49 : vector<1x8x3xf32> to vector<8x3xf32>
    %c0_24 = arith.constant 0 : index
    %c0_25 = arith.constant 0 : index
    %c0_26 = arith.constant 0 : index
    %51 = vector.load %arg1[%c0_24, %c0_25, %c0_26] : memref<1x4x256xf32, #tpu.memory_space<vmem>>, vector<1x4x256xf32>
    %52 = vector.shape_cast %51 : vector<1x4x256xf32> to vector<4x256xf32>
    %53 = vector.extract_strided_slice %42 {offsets = [0, 0], sizes = [4, 1], strides = [1, 1]} : vector<4x3xf32> to vector<4x1xf32>
    %54 = vector.broadcast %53 : vector<4x1xf32> to vector<4x256xf32>
    %55 = arith.mulf %52, %54 : vector<4x256xf32>
    %c0_27 = arith.constant 0 : index
    %c128 = arith.constant 128 : index
    %56 = vector.load %arg26[%c0_27, %c128] : memref<4x1024xf32, #tpu.memory_space<vmem>>, vector<4x256xf32>
    tpu.vector_store %arg26[%c0_27, %c128], %55 {strides = array<i32>} : memref<4x1024xf32, #tpu.memory_space<vmem>>, vector<4x256xf32>,
    %c0_28 = arith.constant 0 : index
    %c0_29 = arith.constant 0 : index
    %c0_30 = arith.constant 0 : index
    %57 = vector.load %arg2[%c0_28, %c0_29, %c0_30] : memref<1x4x256xf32, #tpu.memory_space<vmem>>, vector<1x4x256xf32>
    %58 = vector.shape_cast %57 : vector<1x4x256xf32> to vector<4x256xf32>
    %59 = vector.extract_strided_slice %42 {offsets = [0, 1], sizes = [4, 1], strides = [1, 1]} : vector<4x3xf32> to vector<4x1xf32>
    %60 = vector.broadcast %59 : vector<4x1xf32> to vector<4x256xf32>
    %61 = arith.mulf %58, %60 : vector<4x256xf32>
    %c0_31 = arith.constant 0 : index
    %c384 = arith.constant 384 : index
    %62 = vector.load %arg26[%c0_31, %c384] : memref<4x1024xf32, #tpu.memory_space<vmem>>, vector<4x256xf32>
    tpu.vector_store %arg26[%c0_31, %c384], %61 {strides = array<i32>} : memref<4x1024xf32, #tpu.memory_space<vmem>>, vector<4x256xf32>,
    %c0_32 = arith.constant 0 : index
    %c0_33 = arith.constant 0 : index
    %c0_34 = arith.constant 0 : index
    %63 = vector.load %arg3[%c0_32, %c0_33, %c0_34] : memref<1x4x256xf32, #tpu.memory_space<vmem>>, vector<1x4x256xf32>
    %64 = vector.shape_cast %63 : vector<1x4x256xf32> to vector<4x256xf32>
    %65 = vector.extract_strided_slice %42 {offsets = [0, 2], sizes = [4, 1], strides = [1, 1]} : vector<4x3xf32> to vector<4x1xf32>
    %66 = vector.broadcast %65 : vector<4x1xf32> to vector<4x256xf32>
    %67 = arith.mulf %64, %66 : vector<4x256xf32>
    %c0_35 = arith.constant 0 : index
    %c640 = arith.constant 640 : index
    %68 = vector.load %arg26[%c0_35, %c640] : memref<4x1024xf32, #tpu.memory_space<vmem>>, vector<4x256xf32>
    tpu.vector_store %arg26[%c0_35, %c640], %67 {strides = array<i32>} : memref<4x1024xf32, #tpu.memory_space<vmem>>, vector<4x256xf32>,
    %c0_36 = arith.constant 0 : index
    %c111 = arith.constant 111 : index
    %69 = vector.load %arg26[%c0_36, %c111] : memref<4x1024xf32, #tpu.memory_space<vmem>>, vector<4x768xf32>
    %70 = arith.andi %38, %34 : vector<1x768xi1>
    %cst = arith.constant 0.000000e+00 : f32
    %71 = vector.shape_cast %70 : vector<1x768xi1> to vector<1x768xi1>
    %72 = vector.broadcast %71 : vector<1x768xi1> to vector<4x768xi1>
    %73 = vector.broadcast %cst : f32 to vector<4x768xf32>
    %74 = arith.select %72, %69, %73 : vector<4x768xi1>, vector<4x768xf32>
    %c0_37 = arith.constant 0 : index
    %c0_38 = arith.constant 0 : index
    %75 = vector.load %arg27[%c0_37, %c0_38] : memref<36x768xf32, #tpu.memory_space<vmem>>, vector<4x768xf32>
    tpu.vector_store %arg27[%c0_37, %c0_38], %74 {strides = array<i32>} : memref<36x768xf32, #tpu.memory_space<vmem>>, vector<4x768xf32>,
    %c0_39 = arith.constant 0 : index
    %c112 = arith.constant 112 : index
    %76 = vector.load %arg26[%c0_39, %c112] : memref<4x1024xf32, #tpu.memory_space<vmem>>, vector<4x768xf32>
    %cst_40 = arith.constant 0.000000e+00 : f32
    %77 = vector.shape_cast %38 : vector<1x768xi1> to vector<1x768xi1>
    %78 = vector.broadcast %77 : vector<1x768xi1> to vector<4x768xi1>
    %79 = vector.broadcast %cst_40 : f32 to vector<4x768xf32>
    %80 = arith.select %78, %76, %79 : vector<4x768xi1>, vector<4x768xf32>
    %c4 = arith.constant 4 : index
    %c0_41 = arith.constant 0 : index
    %81 = vector.load %arg27[%c4, %c0_41] : memref<36x768xf32, #tpu.memory_space<vmem>>, vector<4x768xf32>
    tpu.vector_store %arg27[%c4, %c0_41], %80 {strides = array<i32>} : memref<36x768xf32, #tpu.memory_space<vmem>>, vector<4x768xf32>,
    %c0_42 = arith.constant 0 : index
    %c113 = arith.constant 113 : index
    %82 = vector.load %arg26[%c0_42, %c113] : memref<4x1024xf32, #tpu.memory_space<vmem>>, vector<4x768xf32>
    %83 = arith.andi %38, %36 : vector<1x768xi1>
    %cst_43 = arith.constant 0.000000e+00 : f32
    %84 = vector.shape_cast %83 : vector<1x768xi1> to vector<1x768xi1>
    %85 = vector.broadcast %84 : vector<1x768xi1> to vector<4x768xi1>
    %86 = vector.broadcast %cst_43 : f32 to vector<4x768xf32>
    %87 = arith.select %85, %82, %86 : vector<4x768xi1>, vector<4x768xf32>
    %c8 = arith.constant 8 : index
    %c0_44 = arith.constant 0 : index
    %88 = vector.load %arg27[%c8, %c0_44] : memref<36x768xf32, #tpu.memory_space<vmem>>, vector<4x768xf32>
    tpu.vector_store %arg27[%c8, %c0_44], %87 {strides = array<i32>} : memref<36x768xf32, #tpu.memory_space<vmem>>, vector<4x768xf32>,
    %c0_45 = arith.constant 0 : index
    %c127 = arith.constant 127 : index
    %89 = vector.load %arg26[%c0_45, %c127] : memref<4x1024xf32, #tpu.memory_space<vmem>>, vector<4x768xf32>
    %cst_46 = arith.constant 0.000000e+00 : f32
    %90 = vector.shape_cast %34 : vector<1x768xi1> to vector<1x768xi1>
    %91 = vector.broadcast %90 : vector<1x768xi1> to vector<4x768xi1>
    %92 = vector.broadcast %cst_46 : f32 to vector<4x768xf32>
    %93 = arith.select %91, %89, %92 : vector<4x768xi1>, vector<4x768xf32>
    %c12 = arith.constant 12 : index
    %c0_47 = arith.constant 0 : index
    %94 = vector.load %arg27[%c12, %c0_47] : memref<36x768xf32, #tpu.memory_space<vmem>>, vector<4x768xf32>
    tpu.vector_store %arg27[%c12, %c0_47], %93 {strides = array<i32>} : memref<36x768xf32, #tpu.memory_space<vmem>>, vector<4x768xf32>,
    %c0_48 = arith.constant 0 : index
    %c128_49 = arith.constant 128 : index
    %95 = vector.load %arg26[%c0_48, %c128_49] : memref<4x1024xf32, #tpu.memory_space<vmem>>, vector<4x768xf32>
    %c16 = arith.constant 16 : index
    %c0_50 = arith.constant 0 : index
    %96 = vector.load %arg27[%c16, %c0_50] : memref<36x768xf32, #tpu.memory_space<vmem>>, vector<4x768xf32>
    tpu.vector_store %arg27[%c16, %c0_50], %95 {strides = array<i32>} : memref<36x768xf32, #tpu.memory_space<vmem>>, vector<4x768xf32>,
    %c0_51 = arith.constant 0 : index
    %c129 = arith.constant 129 : index
    %97 = vector.load %arg26[%c0_51, %c129] : memref<4x1024xf32, #tpu.memory_space<vmem>>, vector<4x768xf32>
    %cst_52 = arith.constant 0.000000e+00 : f32
    %98 = vector.shape_cast %36 : vector<1x768xi1> to vector<1x768xi1>
    %99 = vector.broadcast %98 : vector<1x768xi1> to vector<4x768xi1>
    %100 = vector.broadcast %cst_52 : f32 to vector<4x768xf32>
    %101 = arith.select %99, %97, %100 : vector<4x768xi1>, vector<4x768xf32>
    %c20 = arith.constant 20 : index
    %c0_53 = arith.constant 0 : index
    %102 = vector.load %arg27[%c20, %c0_53] : memref<36x768xf32, #tpu.memory_space<vmem>>, vector<4x768xf32>
    tpu.vector_store %arg27[%c20, %c0_53], %101 {strides = array<i32>} : memref<36x768xf32, #tpu.memory_space<vmem>>, vector<4x768xf32>,
    %c0_54 = arith.constant 0 : index
    %c143 = arith.constant 143 : index
    %103 = vector.load %arg26[%c0_54, %c143] : memref<4x1024xf32, #tpu.memory_space<vmem>>, vector<4x768xf32>
    %104 = arith.andi %40, %34 : vector<1x768xi1>
    %cst_55 = arith.constant 0.000000e+00 : f32
    %105 = vector.shape_cast %104 : vector<1x768xi1> to vector<1x768xi1>
    %106 = vector.broadcast %105 : vector<1x768xi1> to vector<4x768xi1>
    %107 = vector.broadcast %cst_55 : f32 to vector<4x768xf32>
    %108 = arith.select %106, %103, %107 : vector<4x768xi1>, vector<4x768xf32>
    %c24 = arith.constant 24 : index
    %c0_56 = arith.constant 0 : index
    %109 = vector.load %arg27[%c24, %c0_56] : memref<36x768xf32, #tpu.memory_space<vmem>>, vector<4x768xf32>
    tpu.vector_store %arg27[%c24, %c0_56], %108 {strides = array<i32>} : memref<36x768xf32, #tpu.memory_space<vmem>>, vector<4x768xf32>,
    %c0_57 = arith.constant 0 : index
    %c144 = arith.constant 144 : index
    %110 = vector.load %arg26[%c0_57, %c144] : memref<4x1024xf32, #tpu.memory_space<vmem>>, vector<4x768xf32>
    %cst_58 = arith.constant 0.000000e+00 : f32
    %111 = vector.shape_cast %40 : vector<1x768xi1> to vector<1x768xi1>
    %112 = vector.broadcast %111 : vector<1x768xi1> to vector<4x768xi1>
    %113 = vector.broadcast %cst_58 : f32 to vector<4x768xf32>
    %114 = arith.select %112, %110, %113 : vector<4x768xi1>, vector<4x768xf32>
    %c28 = arith.constant 28 : index
    %c0_59 = arith.constant 0 : index
    %115 = vector.load %arg27[%c28, %c0_59] : memref<36x768xf32, #tpu.memory_space<vmem>>, vector<4x768xf32>
    tpu.vector_store %arg27[%c28, %c0_59], %114 {strides = array<i32>} : memref<36x768xf32, #tpu.memory_space<vmem>>, vector<4x768xf32>,
    %c0_60 = arith.constant 0 : index
    %c145 = arith.constant 145 : index
    %116 = vector.load %arg26[%c0_60, %c145] : memref<4x1024xf32, #tpu.memory_space<vmem>>, vector<4x768xf32>
    %117 = arith.andi %40, %36 : vector<1x768xi1>
    %cst_61 = arith.constant 0.000000e+00 : f32
    %118 = vector.shape_cast %117 : vector<1x768xi1> to vector<1x768xi1>
    %119 = vector.broadcast %118 : vector<1x768xi1> to vector<4x768xi1>
    %120 = vector.broadcast %cst_61 : f32 to vector<4x768xf32>
    %121 = arith.select %119, %116, %120 : vector<4x768xi1>, vector<4x768xf32>
    %c32 = arith.constant 32 : index
    %c0_62 = arith.constant 0 : index
    %122 = vector.load %arg27[%c32, %c0_62] : memref<36x768xf32, #tpu.memory_space<vmem>>, vector<4x768xf32>
    tpu.vector_store %arg27[%c32, %c0_62], %121 {strides = array<i32>} : memref<36x768xf32, #tpu.memory_space<vmem>>, vector<4x768xf32>,
    %c0_63 = arith.constant 0 : index
    %c0_64 = arith.constant 0 : index
    %123 = vector.load %arg12[%c0_63, %c0_64] : memref<8x36xbf16, #tpu.memory_space<vmem>>, vector<8x36xbf16>
    %c0_65 = arith.constant 0 : index
    %c0_66 = arith.constant 0 : index
    %124 = vector.load %arg27[%c0_65, %c0_66] : memref<36x768xf32, #tpu.memory_space<vmem>>, vector<36x768xf32>
    %125 = arith.truncf %124 : vector<36x768xf32> to vector<36x768xbf16>
    %cst_67 = arith.constant dense<0.000000e+00> : vector<8x768xf32>
    %126 = tpu.matmul %123, %125, %cst_67 {dimension_numbers = #tpu.dot_dimension_numbers<[1], [0], [0], [1], [0, 0, 1, 1], [], []>} : vector<8x36xbf16>, vector<36x768xbf16>, vector<8x768xf32> -> vector<8x768xf32>
    %127 = vector.extract_strided_slice %126 {offsets = [0, 0], sizes = [8, 256], strides = [1, 1]} : vector<8x768xf32> to vector<8x256xf32>
    %128 = vector.extract_strided_slice %44 {offsets = [0, 0], sizes = [8, 1], strides = [1, 1]} : vector<8x3xf32> to vector<8x1xf32>
    %129 = vector.broadcast %128 : vector<8x1xf32> to vector<8x256xf32>
    %130 = arith.mulf %127, %129 : vector<8x256xf32>
    %c0_68 = arith.constant 0 : index
    %c0_69 = arith.constant 0 : index
    %131 = vector.load %arg18[%c0_68, %c0_69] : memref<1x256xf32, #tpu.memory_space<vmem>>, vector<1x256xf32>
    %132 = vector.broadcast %131 : vector<1x256xf32> to vector<8x256xf32>
    %133 = arith.addf %130, %132 : vector<8x256xf32>
    %c0_70 = arith.constant 0 : index
    %c0_71 = arith.constant 0 : index
    %134 = vector.load %arg15[%c0_70, %c0_71] : memref<8x1xf32, #tpu.memory_space<vmem>>, vector<8x1xf32>
    %135 = vector.broadcast %134 : vector<8x1xf32> to vector<8x256xf32>
    %136 = arith.addf %133, %135 : vector<8x256xf32>
    %cst_72 = arith.constant 0.000000e+00 : f32
    %137 = vector.broadcast %cst_72 : f32 to vector<8x256xf32>
    %138 = arith.cmpf oge, %136, %137 : vector<8x256xf32>
    %cst_73 = arith.constant 2.000000e-01 : f32
    %139 = vector.broadcast %cst_73 : f32 to vector<8x256xf32>
    %140 = arith.mulf %139, %136 : vector<8x256xf32>
    %141 = arith.select %138, %136, %140 : vector<8x256xi1>, vector<8x256xf32>
    %cst_74 = arith.constant 1.41421354 : f32
    %142 = vector.broadcast %cst_74 : f32 to vector<8x256xf32>
    %143 = arith.mulf %141, %142 : vector<8x256xf32>
    %144 = vector.extract_strided_slice %46 {offsets = [0, 0], sizes = [8, 1], strides = [1, 1]} : vector<8x3xf32> to vector<8x1xf32>
    %145 = vector.broadcast %144 : vector<8x1xf32> to vector<8x256xf32>
    %146 = arith.mulf %143, %145 : vector<8x256xf32>
    %c0_75 = arith.constant 0 : index
    %c128_76 = arith.constant 128 : index
    %147 = vector.load %arg28[%c0_75, %c128_76] : memref<8x1024xf32, #tpu.memory_space<vmem>>, vector<8x256xf32>
    tpu.vector_store %arg28[%c0_75, %c128_76], %146 {strides = array<i32>} : memref<8x1024xf32, #tpu.memory_space<vmem>>, vector<8x256xf32>,
    %148 = vector.extract_strided_slice %126 {offsets = [0, 256], sizes = [8, 256], strides = [1, 1]} : vector<8x768xf32> to vector<8x256xf32>
    %149 = vector.extract_strided_slice %44 {offsets = [0, 1], sizes = [8, 1], strides = [1, 1]} : vector<8x3xf32> to vector<8x1xf32>
    %150 = vector.broadcast %149 : vector<8x1xf32> to vector<8x256xf32>
    %151 = arith.mulf %148, %150 : vector<8x256xf32>
    %c0_77 = arith.constant 0 : index
    %c0_78 = arith.constant 0 : index
    %152 = vector.load %arg18[%c0_77, %c0_78] : memref<1x256xf32, #tpu.memory_space<vmem>>, vector<1x256xf32>
    %153 = vector.broadcast %152 : vector<1x256xf32> to vector<8x256xf32>
    %154 = arith.addf %151, %153 : vector<8x256xf32>
    %c0_79 = arith.constant 0 : index
    %c0_80 = arith.constant 0 : index
    %155 = vector.load %arg15[%c0_79, %c0_80] : memref<8x1xf32, #tpu.memory_space<vmem>>, vector<8x1xf32>
    %156 = vector.broadcast %155 : vector<8x1xf32> to vector<8x256xf32>
    %157 = arith.addf %154, %156 : vector<8x256xf32>
    %cst_81 = arith.constant 0.000000e+00 : f32
    %158 = vector.broadcast %cst_81 : f32 to vector<8x256xf32>
    %159 = arith.cmpf oge, %157, %158 : vector<8x256xf32>
    %cst_82 = arith.constant 2.000000e-01 : f32
    %160 = vector.broadcast %cst_82 : f32 to vector<8x256xf32>
    %161 = arith.mulf %160, %157 : vector<8x256xf32>
    %162 = arith.select %159, %157, %161 : vector<8x256xi1>, vector<8x256xf32>
    %cst_83 = arith.constant 1.41421354 : f32
    %163 = vector.broadcast %cst_83 : f32 to vector<8x256xf32>
    %164 = arith.mulf %162, %163 : vector<8x256xf32>
    %165 = vector.extract_strided_slice %46 {offsets = [0, 1], sizes = [8, 1], strides = [1, 1]} : vector<8x3xf32> to vector<8x1xf32>
    %166 = vector.broadcast %165 : vector<8x1xf32> to vector<8x256xf32>
    %167 = arith.mulf %164, %166 : vector<8x256xf32>
    %c0_84 = arith.constant 0 : index
    %c384_85 = arith.constant 384 : index
    %168 = vector.load %arg28[%c0_84, %c384_85] : memref<8x1024xf32, #tpu.memory_space<vmem>>, vector<8x256xf32>
    tpu.vector_store %arg28[%c0_84, %c384_85], %167 {strides = array<i32>} : memref<8x1024xf32, #tpu.memory_space<vmem>>, vector<8x256xf32>,
    %169 = vector.extract_strided_slice %126 {offsets = [0, 512], sizes = [8, 256], strides = [1, 1]} : vector<8x768xf32> to vector<8x256xf32>
    %170 = vector.extract_strided_slice %44 {offsets = [0, 2], sizes = [8, 1], strides = [1, 1]} : vector<8x3xf32> to vector<8x1xf32>
    %171 = vector.broadcast %170 : vector<8x1xf32> to vector<8x256xf32>
    %172 = arith.mulf %169, %171 : vector<8x256xf32>
    %c0_86 = arith.constant 0 : index
    %c0_87 = arith.constant 0 : index
    %173 = vector.load %arg18[%c0_86, %c0_87] : memref<1x256xf32, #tpu.memory_space<vmem>>, vector<1x256xf32>
    %174 = vector.broadcast %173 : vector<1x256xf32> to vector<8x256xf32>
    %175 = arith.addf %172, %174 : vector<8x256xf32>
    %c0_88 = arith.constant 0 : index
    %c0_89 = arith.constant 0 : index
    %176 = vector.load %arg15[%c0_88, %c0_89] : memref<8x1xf32, #tpu.memory_space<vmem>>, vector<8x1xf32>
    %177 = vector.broadcast %176 : vector<8x1xf32> to vector<8x256xf32>
    %178 = arith.addf %175, %177 : vector<8x256xf32>
    %cst_90 = arith.constant 0.000000e+00 : f32
    %179 = vector.broadcast %cst_90 : f32 to vector<8x256xf32>
    %180 = arith.cmpf oge, %178, %179 : vector<8x256xf32>
    %cst_91 = arith.constant 2.000000e-01 : f32
    %181 = vector.broadcast %cst_91 : f32 to vector<8x256xf32>
    %182 = arith.mulf %181, %178 : vector<8x256xf32>
    %183 = arith.select %180, %178, %182 : vector<8x256xi1>, vector<8x256xf32>
    %cst_92 = arith.constant 1.41421354 : f32
    %184 = vector.broadcast %cst_92 : f32 to vector<8x256xf32>
    %185 = arith.mulf %183, %184 : vector<8x256xf32>
    %186 = vector.extract_strided_slice %46 {offsets = [0, 2], sizes = [8, 1], strides = [1, 1]} : vector<8x3xf32> to vector<8x1xf32>
    %187 = vector.broadcast %186 : vector<8x1xf32> to vector<8x256xf32>
    %188 = arith.mulf %185, %187 : vector<8x256xf32>
    %c0_93 = arith.constant 0 : index
    %c640_94 = arith.constant 640 : index
    %189 = vector.load %arg28[%c0_93, %c640_94] : memref<8x1024xf32, #tpu.memory_space<vmem>>, vector<8x256xf32>
    tpu.vector_store %arg28[%c0_93, %c640_94], %188 {strides = array<i32>} : memref<8x1024xf32, #tpu.memory_space<vmem>>, vector<8x256xf32>,
    %c0_95 = arith.constant 0 : index
    %c111_96 = arith.constant 111 : index
    %190 = vector.load %arg28[%c0_95, %c111_96] : memref<8x1024xf32, #tpu.memory_space<vmem>>, vector<8x768xf32>
    %191 = arith.andi %38, %34 : vector<1x768xi1>
    %cst_97 = arith.constant 0.000000e+00 : f32
    %192 = vector.shape_cast %191 : vector<1x768xi1> to vector<1x768xi1>
    %193 = vector.broadcast %192 : vector<1x768xi1> to vector<8x768xi1>
    %194 = vector.broadcast %cst_97 : f32 to vector<8x768xf32>
    %195 = arith.select %193, %190, %194 : vector<8x768xi1>, vector<8x768xf32>
    %c0_98 = arith.constant 0 : index
    %c0_99 = arith.constant 0 : index
    %196 = vector.load %arg29[%c0_98, %c0_99] : memref<72x768xf32, #tpu.memory_space<vmem>>, vector<8x768xf32>
    tpu.vector_store %arg29[%c0_98, %c0_99], %195 {strides = array<i32>} : memref<72x768xf32, #tpu.memory_space<vmem>>, vector<8x768xf32>,
    %c0_100 = arith.constant 0 : index
    %c112_101 = arith.constant 112 : index
    %197 = vector.load %arg28[%c0_100, %c112_101] : memref<8x1024xf32, #tpu.memory_space<vmem>>, vector<8x768xf32>
    %cst_102 = arith.constant 0.000000e+00 : f32
    %198 = vector.shape_cast %38 : vector<1x768xi1> to vector<1x768xi1>
    %199 = vector.broadcast %198 : vector<1x768xi1> to vector<8x768xi1>
    %200 = vector.broadcast %cst_102 : f32 to vector<8x768xf32>
    %201 = arith.select %199, %197, %200 : vector<8x768xi1>, vector<8x768xf32>
    %c8_103 = arith.constant 8 : index
    %c0_104 = arith.constant 0 : index
    %202 = vector.load %arg29[%c8_103, %c0_104] : memref<72x768xf32, #tpu.memory_space<vmem>>, vector<8x768xf32>
    tpu.vector_store %arg29[%c8_103, %c0_104], %201 {strides = array<i32>} : memref<72x768xf32, #tpu.memory_space<vmem>>, vector<8x768xf32>,
    %c0_105 = arith.constant 0 : index
    %c113_106 = arith.constant 113 : index
    %203 = vector.load %arg28[%c0_105, %c113_106] : memref<8x1024xf32, #tpu.memory_space<vmem>>, vector<8x768xf32>
    %204 = arith.andi %38, %36 : vector<1x768xi1>
    %cst_107 = arith.constant 0.000000e+00 : f32
    %205 = vector.shape_cast %204 : vector<1x768xi1> to vector<1x768xi1>
    %206 = vector.broadcast %205 : vector<1x768xi1> to vector<8x768xi1>
    %207 = vector.broadcast %cst_107 : f32 to vector<8x768xf32>
    %208 = arith.select %206, %203, %207 : vector<8x768xi1>, vector<8x768xf32>
    %c16_108 = arith.constant 16 : index
    %c0_109 = arith.constant 0 : index
    %209 = vector.load %arg29[%c16_108, %c0_109] : memref<72x768xf32, #tpu.memory_space<vmem>>, vector<8x768xf32>
    tpu.vector_store %arg29[%c16_108, %c0_109], %208 {strides = array<i32>} : memref<72x768xf32, #tpu.memory_space<vmem>>, vector<8x768xf32>,
    %c0_110 = arith.constant 0 : index
    %c127_111 = arith.constant 127 : index
    %210 = vector.load %arg28[%c0_110, %c127_111] : memref<8x1024xf32, #tpu.memory_space<vmem>>, vector<8x768xf32>
    %cst_112 = arith.constant 0.000000e+00 : f32
    %211 = vector.shape_cast %34 : vector<1x768xi1> to vector<1x768xi1>
    %212 = vector.broadcast %211 : vector<1x768xi1> to vector<8x768xi1>
    %213 = vector.broadcast %cst_112 : f32 to vector<8x768xf32>
    %214 = arith.select %212, %210, %213 : vector<8x768xi1>, vector<8x768xf32>
    %c24_113 = arith.constant 24 : index
    %c0_114 = arith.constant 0 : index
    %215 = vector.load %arg29[%c24_113, %c0_114] : memref<72x768xf32, #tpu.memory_space<vmem>>, vector<8x768xf32>
    tpu.vector_store %arg29[%c24_113, %c0_114], %214 {strides = array<i32>} : memref<72x768xf32, #tpu.memory_space<vmem>>, vector<8x768xf32>,
    %c0_115 = arith.constant 0 : index
    %c128_116 = arith.constant 128 : index
    %216 = vector.load %arg28[%c0_115, %c128_116] : memref<8x1024xf32, #tpu.memory_space<vmem>>, vector<8x768xf32>
    %c32_117 = arith.constant 32 : index
    %c0_118 = arith.constant 0 : index
    %217 = vector.load %arg29[%c32_117, %c0_118] : memref<72x768xf32, #tpu.memory_space<vmem>>, vector<8x768xf32>
    tpu.vector_store %arg29[%c32_117, %c0_118], %216 {strides = array<i32>} : memref<72x768xf32, #tpu.memory_space<vmem>>, vector<8x768xf32>,
    %c0_119 = arith.constant 0 : index
    %c129_120 = arith.constant 129 : index
    %218 = vector.load %arg28[%c0_119, %c129_120] : memref<8x1024xf32, #tpu.memory_space<vmem>>, vector<8x768xf32>
    %cst_121 = arith.constant 0.000000e+00 : f32
    %219 = vector.shape_cast %36 : vector<1x768xi1> to vector<1x768xi1>
    %220 = vector.broadcast %219 : vector<1x768xi1> to vector<8x768xi1>
    %221 = vector.broadcast %cst_121 : f32 to vector<8x768xf32>
    %222 = arith.select %220, %218, %221 : vector<8x768xi1>, vector<8x768xf32>
    %c40 = arith.constant 40 : index
    %c0_122 = arith.constant 0 : index
    %223 = vector.load %arg29[%c40, %c0_122] : memref<72x768xf32, #tpu.memory_space<vmem>>, vector<8x768xf32>
    tpu.vector_store %arg29[%c40, %c0_122], %222 {strides = array<i32>} : memref<72x768xf32, #tpu.memory_space<vmem>>, vector<8x768xf32>,
    %c0_123 = arith.constant 0 : index
    %c143_124 = arith.constant 143 : index
    %224 = vector.load %arg28[%c0_123, %c143_124] : memref<8x1024xf32, #tpu.memory_space<vmem>>, vector<8x768xf32>
    %225 = arith.andi %40, %34 : vector<1x768xi1>
    %cst_125 = arith.constant 0.000000e+00 : f32
    %226 = vector.shape_cast %225 : vector<1x768xi1> to vector<1x768xi1>
    %227 = vector.broadcast %226 : vector<1x768xi1> to vector<8x768xi1>
    %228 = vector.broadcast %cst_125 : f32 to vector<8x768xf32>
    %229 = arith.select %227, %224, %228 : vector<8x768xi1>, vector<8x768xf32>
    %c48 = arith.constant 48 : index
    %c0_126 = arith.constant 0 : index
    %230 = vector.load %arg29[%c48, %c0_126] : memref<72x768xf32, #tpu.memory_space<vmem>>, vector<8x768xf32>
    tpu.vector_store %arg29[%c48, %c0_126], %229 {strides = array<i32>} : memref<72x768xf32, #tpu.memory_space<vmem>>, vector<8x768xf32>,
    %c0_127 = arith.constant 0 : index
    %c144_128 = arith.constant 144 : index
    %231 = vector.load %arg28[%c0_127, %c144_128] : memref<8x1024xf32, #tpu.memory_space<vmem>>, vector<8x768xf32>
    %cst_129 = arith.constant 0.000000e+00 : f32
    %232 = vector.shape_cast %40 : vector<1x768xi1> to vector<1x768xi1>
    %233 = vector.broadcast %232 : vector<1x768xi1> to vector<8x768xi1>
    %234 = vector.broadcast %cst_129 : f32 to vector<8x768xf32>
    %235 = arith.select %233, %231, %234 : vector<8x768xi1>, vector<8x768xf32>
    %c56 = arith.constant 56 : index
    %c0_130 = arith.constant 0 : index
    %236 = vector.load %arg29[%c56, %c0_130] : memref<72x768xf32, #tpu.memory_space<vmem>>, vector<8x768xf32>
    tpu.vector_store %arg29[%c56, %c0_130], %235 {strides = array<i32>} : memref<72x768xf32, #tpu.memory_space<vmem>>, vector<8x768xf32>,
    %c0_131 = arith.constant 0 : index
    %c145_132 = arith.constant 145 : index
    %237 = vector.load %arg28[%c0_131, %c145_132] : memref<8x1024xf32, #tpu.memory_space<vmem>>, vector<8x768xf32>
    %238 = arith.andi %40, %36 : vector<1x768xi1>
    %cst_133 = arith.constant 0.000000e+00 : f32
    %239 = vector.shape_cast %238 : vector<1x768xi1> to vector<1x768xi1>
    %240 = vector.broadcast %239 : vector<1x768xi1> to vector<8x768xi1>
    %241 = vector.broadcast %cst_133 : f32 to vector<8x768xf32>
    %242 = arith.select %240, %237, %241 : vector<8x768xi1>, vector<8x768xf32>
    %c64 = arith.constant 64 : index
    %c0_134 = arith.constant 0 : index
    %243 = vector.load %arg29[%c64, %c0_134] : memref<72x768xf32, #tpu.memory_space<vmem>>, vector<8x768xf32>
    tpu.vector_store %arg29[%c64, %c0_134], %242 {strides = array<i32>} : memref<72x768xf32, #tpu.memory_space<vmem>>, vector<8x768xf32>,
    %c0_135 = arith.constant 0 : index
    %c0_136 = arith.constant 0 : index
    %244 = vector.load %arg13[%c0_135, %c0_136] : memref<8x72xbf16, #tpu.memory_space<vmem>>, vector<8x72xbf16>
    %c0_137 = arith.constant 0 : index
    %c0_138 = arith.constant 0 : index
    %245 = vector.load %arg29[%c0_137, %c0_138] : memref<72x768xf32, #tpu.memory_space<vmem>>, vector<72x768xf32>
    %246 = arith.truncf %245 : vector<72x768xf32> to vector<72x768xbf16>
    %cst_139 = arith.constant dense<0.000000e+00> : vector<8x768xf32>
    %247 = tpu.matmul %244, %246, %cst_139 {dimension_numbers = #tpu.dot_dimension_numbers<[1], [0], [0], [1], [0, 0, 1, 1], [], []>} : vector<8x72xbf16>, vector<72x768xbf16>, vector<8x768xf32> -> vector<8x768xf32>
    %248 = vector.extract_strided_slice %247 {offsets = [0, 0], sizes = [8, 256], strides = [1, 1]} : vector<8x768xf32> to vector<8x256xf32>
    %249 = vector.extract_strided_slice %48 {offsets = [0, 0], sizes = [8, 1], strides = [1, 1]} : vector<8x3xf32> to vector<8x1xf32>
    %250 = vector.broadcast %249 : vector<8x1xf32> to vector<8x256xf32>
    %251 = arith.mulf %248, %250 : vector<8x256xf32>
    %c0_140 = arith.constant 0 : index
    %c0_141 = arith.constant 0 : index
    %252 = vector.load %arg19[%c0_140, %c0_141] : memref<1x256xf32, #tpu.memory_space<vmem>>, vector<1x256xf32>
    %253 = vector.broadcast %252 : vector<1x256xf32> to vector<8x256xf32>
    %254 = arith.addf %251, %253 : vector<8x256xf32>
    %c0_142 = arith.constant 0 : index
    %c0_143 = arith.constant 0 : index
    %255 = vector.load %arg16[%c0_142, %c0_143] : memref<8x1xf32, #tpu.memory_space<vmem>>, vector<8x1xf32>
    %256 = vector.broadcast %255 : vector<8x1xf32> to vector<8x256xf32>
    %257 = arith.addf %254, %256 : vector<8x256xf32>
    %cst_144 = arith.constant 0.000000e+00 : f32
    %258 = vector.broadcast %cst_144 : f32 to vector<8x256xf32>
    %259 = arith.cmpf oge, %257, %258 : vector<8x256xf32>
    %cst_145 = arith.constant 2.000000e-01 : f32
    %260 = vector.broadcast %cst_145 : f32 to vector<8x256xf32>
    %261 = arith.mulf %260, %257 : vector<8x256xf32>
    %262 = arith.select %259, %257, %261 : vector<8x256xi1>, vector<8x256xf32>
    %cst_146 = arith.constant 1.41421354 : f32
    %263 = vector.broadcast %cst_146 : f32 to vector<8x256xf32>
    %264 = arith.mulf %262, %263 : vector<8x256xf32>
    %c0_147 = arith.constant 0 : index
    %c0_148 = arith.constant 0 : index
    %c0_149 = arith.constant 0 : index
    %265 = vector.load %arg20[%c0_147, %c0_148, %c0_149] : memref<1x8x256xf32, #tpu.memory_space<vmem>>, vector<1x8x256xf32>
    %266 = vector.shape_cast %265 : vector<1x8x256xf32> to vector<8x256xf32>
    %267 = vector.shape_cast %264 : vector<8x256xf32> to vector<1x8x256xf32>
    tpu.vector_store %arg20[%c0_147, %c0_148, %c0_149], %267 {strides = array<i32>} : memref<1x8x256xf32, #tpu.memory_space<vmem>>, vector<1x8x256xf32>,
    %c0_150 = arith.constant 0 : index
    %c0_151 = arith.constant 0 : index
    %268 = vector.load %arg14[%c0_150, %c0_151] : memref<3x8xbf16, #tpu.memory_space<vmem>>, vector<3x8xbf16>
    %269 = vector.extract_strided_slice %50 {offsets = [0, 0], sizes = [8, 1], strides = [1, 1]} : vector<8x3xf32> to vector<8x1xf32>
    %270 = vector.broadcast %269 : vector<8x1xf32> to vector<8x256xf32>
    %271 = arith.mulf %264, %270 : vector<8x256xf32>
    %272 = arith.truncf %271 : vector<8x256xf32> to vector<8x256xbf16>
    %cst_152 = arith.constant dense<0.000000e+00> : vector<3x256xf32>
    %273 = tpu.matmul %268, %272, %cst_152 {dimension_numbers = #tpu.dot_dimension_numbers<[1], [0], [0], [1], [0, 0, 1, 1], [], []>} : vector<3x8xbf16>, vector<8x256xbf16>, vector<3x256xf32> -> vector<3x256xf32>
    %c0_153 = arith.constant 0 : index
    %c0_154 = arith.constant 0 : index
    %c0_155 = arith.constant 0 : index
    %274 = vector.load %arg4[%c0_153, %c0_154, %c0_155] : memref<1x3x256xf32, #tpu.memory_space<vmem>>, vector<1x3x256xf32>
    %275 = vector.shape_cast %274 : vector<1x3x256xf32> to vector<3x256xf32>
    %276 = arith.addf %275, %273 : vector<3x256xf32>
    %c0_156 = arith.constant 0 : index
    %c0_157 = arith.constant 0 : index
    %277 = vector.load %arg17[%c0_156, %c0_157] : memref<3x1xf32, #tpu.memory_space<vmem>>, vector<3x1xf32>
    %278 = vector.broadcast %277 : vector<3x1xf32> to vector<3x256xf32>
    %279 = arith.addf %276, %278 : vector<3x256xf32>
    %c0_158 = arith.constant 0 : index
    %c0_159 = arith.constant 0 : index
    %c0_160 = arith.constant 0 : index
    %280 = vector.load %arg23[%c0_158, %c0_159, %c0_160] : memref<1x3x256xf32, #tpu.memory_space<vmem>>, vector<1x3x256xf32>
    %281 = vector.shape_cast %280 : vector<1x3x256xf32> to vector<3x256xf32>
    %282 = vector.shape_cast %279 : vector<3x256xf32> to vector<1x3x256xf32>
    tpu.vector_store %arg23[%c0_158, %c0_159, %c0_160], %282 {strides = array<i32>} : memref<1x3x256xf32, #tpu.memory_space<vmem>>, vector<1x3x256xf32>,
    %283 = vector.extract_strided_slice %247 {offsets = [0, 256], sizes = [8, 256], strides = [1, 1]} : vector<8x768xf32> to vector<8x256xf32>
    %284 = vector.extract_strided_slice %48 {offsets = [0, 1], sizes = [8, 1], strides = [1, 1]} : vector<8x3xf32> to vector<8x1xf32>
    %285 = vector.broadcast %284 : vector<8x1xf32> to vector<8x256xf32>
    %286 = arith.mulf %283, %285 : vector<8x256xf32>
    %c0_161 = arith.constant 0 : index
    %c0_162 = arith.constant 0 : index
    %287 = vector.load %arg19[%c0_161, %c0_162] : memref<1x256xf32, #tpu.memory_space<vmem>>, vector<1x256xf32>
    %288 = vector.broadcast %287 : vector<1x256xf32> to vector<8x256xf32>
    %289 = arith.addf %286, %288 : vector<8x256xf32>
    %c0_163 = arith.constant 0 : index
    %c0_164 = arith.constant 0 : index
    %290 = vector.load %arg16[%c0_163, %c0_164] : memref<8x1xf32, #tpu.memory_space<vmem>>, vector<8x1xf32>
    %291 = vector.broadcast %290 : vector<8x1xf32> to vector<8x256xf32>
    %292 = arith.addf %289, %291 : vector<8x256xf32>
    %cst_165 = arith.constant 0.000000e+00 : f32
    %293 = vector.broadcast %cst_165 : f32 to vector<8x256xf32>
    %294 = arith.cmpf oge, %292, %293 : vector<8x256xf32>
    %cst_166 = arith.constant 2.000000e-01 : f32
    %295 = vector.broadcast %cst_166 : f32 to vector<8x256xf32>
    %296 = arith.mulf %295, %292 : vector<8x256xf32>
    %297 = arith.select %294, %292, %296 : vector<8x256xi1>, vector<8x256xf32>
    %cst_167 = arith.constant 1.41421354 : f32
    %298 = vector.broadcast %cst_167 : f32 to vector<8x256xf32>
    %299 = arith.mulf %297, %298 : vector<8x256xf32>
    %c0_168 = arith.constant 0 : index
    %c0_169 = arith.constant 0 : index
    %c0_170 = arith.constant 0 : index
    %300 = vector.load %arg21[%c0_168, %c0_169, %c0_170] : memref<1x8x256xf32, #tpu.memory_space<vmem>>, vector<1x8x256xf32>
    %301 = vector.shape_cast %300 : vector<1x8x256xf32> to vector<8x256xf32>
    %302 = vector.shape_cast %299 : vector<8x256xf32> to vector<1x8x256xf32>
    tpu.vector_store %arg21[%c0_168, %c0_169, %c0_170], %302 {strides = array<i32>} : memref<1x8x256xf32, #tpu.memory_space<vmem>>, vector<1x8x256xf32>,
    %c0_171 = arith.constant 0 : index
    %c0_172 = arith.constant 0 : index
    %303 = vector.load %arg14[%c0_171, %c0_172] : memref<3x8xbf16, #tpu.memory_space<vmem>>, vector<3x8xbf16>
    %304 = vector.extract_strided_slice %50 {offsets = [0, 1], sizes = [8, 1], strides = [1, 1]} : vector<8x3xf32> to vector<8x1xf32>
    %305 = vector.broadcast %304 : vector<8x1xf32> to vector<8x256xf32>
    %306 = arith.mulf %299, %305 : vector<8x256xf32>
    %307 = arith.truncf %306 : vector<8x256xf32> to vector<8x256xbf16>
    %cst_173 = arith.constant dense<0.000000e+00> : vector<3x256xf32>
    %308 = tpu.matmul %303, %307, %cst_173 {dimension_numbers = #tpu.dot_dimension_numbers<[1], [0], [0], [1], [0, 0, 1, 1], [], []>} : vector<3x8xbf16>, vector<8x256xbf16>, vector<3x256xf32> -> vector<3x256xf32>
    %c0_174 = arith.constant 0 : index
    %c0_175 = arith.constant 0 : index
    %c0_176 = arith.constant 0 : index
    %309 = vector.load %arg5[%c0_174, %c0_175, %c0_176] : memref<1x3x256xf32, #tpu.memory_space<vmem>>, vector<1x3x256xf32>
    %310 = vector.shape_cast %309 : vector<1x3x256xf32> to vector<3x256xf32>
    %311 = arith.addf %310, %308 : vector<3x256xf32>
    %c0_177 = arith.constant 0 : index
    %c0_178 = arith.constant 0 : index
    %312 = vector.load %arg17[%c0_177, %c0_178] : memref<3x1xf32, #tpu.memory_space<vmem>>, vector<3x1xf32>
    %313 = vector.broadcast %312 : vector<3x1xf32> to vector<3x256xf32>
    %314 = arith.addf %311, %313 : vector<3x256xf32>
    %c0_179 = arith.constant 0 : index
    %c0_180 = arith.constant 0 : index
    %c0_181 = arith.constant 0 : index
    %315 = vector.load %arg24[%c0_179, %c0_180, %c0_181] : memref<1x3x256xf32, #tpu.memory_space<vmem>>, vector<1x3x256xf32>
    %316 = vector.shape_cast %315 : vector<1x3x256xf32> to vector<3x256xf32>
    %317 = vector.shape_cast %314 : vector<3x256xf32> to vector<1x3x256xf32>
    tpu.vector_store %arg24[%c0_179, %c0_180, %c0_181], %317 {strides = array<i32>} : memref<1x3x256xf32, #tpu.memory_space<vmem>>, vector<1x3x256xf32>,
    %318 = vector.extract_strided_slice %247 {offsets = [0, 512], sizes = [8, 256], strides = [1, 1]} : vector<8x768xf32> to vector<8x256xf32>
    %319 = vector.extract_strided_slice %48 {offsets = [0, 2], sizes = [8, 1], strides = [1, 1]} : vector<8x3xf32> to vector<8x1xf32>
    %320 = vector.broadcast %319 : vector<8x1xf32> to vector<8x256xf32>
    %321 = arith.mulf %318, %320 : vector<8x256xf32>
    %c0_182 = arith.constant 0 : index
    %c0_183 = arith.constant 0 : index
    %322 = vector.load %arg19[%c0_182, %c0_183] : memref<1x256xf32, #tpu.memory_space<vmem>>, vector<1x256xf32>
    %323 = vector.broadcast %322 : vector<1x256xf32> to vector<8x256xf32>
    %324 = arith.addf %321, %323 : vector<8x256xf32>
    %c0_184 = arith.constant 0 : index
    %c0_185 = arith.constant 0 : index
    %325 = vector.load %arg16[%c0_184, %c0_185] : memref<8x1xf32, #tpu.memory_space<vmem>>, vector<8x1xf32>
    %326 = vector.broadcast %325 : vector<8x1xf32> to vector<8x256xf32>
    %327 = arith.addf %324, %326 : vector<8x256xf32>
    %cst_186 = arith.constant 0.000000e+00 : f32
    %328 = vector.broadcast %cst_186 : f32 to vector<8x256xf32>
    %329 = arith.cmpf oge, %327, %328 : vector<8x256xf32>
    %cst_187 = arith.constant 2.000000e-01 : f32
    %330 = vector.broadcast %cst_187 : f32 to vector<8x256xf32>
    %331 = arith.mulf %330, %327 : vector<8x256xf32>
    %332 = arith.select %329, %327, %331 : vector<8x256xi1>, vector<8x256xf32>
    %cst_188 = arith.constant 1.41421354 : f32
    %333 = vector.broadcast %cst_188 : f32 to vector<8x256xf32>
    %334 = arith.mulf %332, %333 : vector<8x256xf32>
    %c0_189 = arith.constant 0 : index
    %c0_190 = arith.constant 0 : index
    %c0_191 = arith.constant 0 : index
    %335 = vector.load %arg22[%c0_189, %c0_190, %c0_191] : memref<1x8x256xf32, #tpu.memory_space<vmem>>, vector<1x8x256xf32>
    %336 = vector.shape_cast %335 : vector<1x8x256xf32> to vector<8x256xf32>
    %337 = vector.shape_cast %334 : vector<8x256xf32> to vector<1x8x256xf32>
    tpu.vector_store %arg22[%c0_189, %c0_190, %c0_191], %337 {strides = array<i32>} : memref<1x8x256xf32, #tpu.memory_space<vmem>>, vector<1x8x256xf32>,
    %c0_192 = arith.constant 0 : index
    %c0_193 = arith.constant 0 : index
    %338 = vector.load %arg14[%c0_192, %c0_193] : memref<3x8xbf16, #tpu.memory_space<vmem>>, vector<3x8xbf16>
    %339 = vector.extract_strided_slice %50 {offsets = [0, 2], sizes = [8, 1], strides = [1, 1]} : vector<8x3xf32> to vector<8x1xf32>
    %340 = vector.broadcast %339 : vector<8x1xf32> to vector<8x256xf32>
    %341 = arith.mulf %334, %340 : vector<8x256xf32>
    %342 = arith.truncf %341 : vector<8x256xf32> to vector<8x256xbf16>
    %cst_194 = arith.constant dense<0.000000e+00> : vector<3x256xf32>
    %343 = tpu.matmul %338, %342, %cst_194 {dimension_numbers = #tpu.dot_dimension_numbers<[1], [0], [0], [1], [0, 0, 1, 1], [], []>} : vector<3x8xbf16>, vector<8x256xbf16>, vector<3x256xf32> -> vector<3x256xf32>
    %c0_195 = arith.constant 0 : index
    %c0_196 = arith.constant 0 : index
    %c0_197 = arith.constant 0 : index
    %344 = vector.load %arg6[%c0_195, %c0_196, %c0_197] : memref<1x3x256xf32, #tpu.memory_space<vmem>>, vector<1x3x256xf32>
    %345 = vector.shape_cast %344 : vector<1x3x256xf32> to vector<3x256xf32>
    %346 = arith.addf %345, %343 : vector<3x256xf32>
    %c0_198 = arith.constant 0 : index
    %c0_199 = arith.constant 0 : index
    %347 = vector.load %arg17[%c0_198, %c0_199] : memref<3x1xf32, #tpu.memory_space<vmem>>, vector<3x1xf32>
    %348 = vector.broadcast %347 : vector<3x1xf32> to vector<3x256xf32>
    %349 = arith.addf %346, %348 : vector<3x256xf32>
    %c0_200 = arith.constant 0 : index
    %c0_201 = arith.constant 0 : index
    %c0_202 = arith.constant 0 : index
    %350 = vector.load %arg25[%c0_200, %c0_201, %c0_202] : memref<1x3x256xf32, #tpu.memory_space<vmem>>, vector<1x3x256xf32>
    %351 = vector.shape_cast %350 : vector<1x3x256xf32> to vector<3x256xf32>
    %352 = vector.shape_cast %349 : vector<3x256xf32> to vector<1x3x256xf32>
    tpu.vector_store %arg25[%c0_200, %c0_201, %c0_202], %352 {strides = array<i32>} : memref<1x3x256xf32, #tpu.memory_space<vmem>>, vector<1x3x256xf32>,
    return
  }
  func.func @transform_0(%arg0: i32) -> (i32, i32, i32) {
    %c0_i32 = arith.constant 0 : i32
    %c0_i32_0 = arith.constant 0 : i32
    %c0_i32_1 = arith.constant 0 : i32
    return %arg0, %c0_i32, %c0_i32_0 : i32, i32, i32
  }
  func.func @transform_1(%arg0: i32) -> (i32, i32, i32) {
    %c0_i32 = arith.constant 0 : i32
    %c0_i32_0 = arith.constant 0 : i32
    %c0_i32_1 = arith.constant 0 : i32
    return %arg0, %c0_i32, %c0_i32_0 : i32, i32, i32
  }
  func.func @transform_2(%arg0: i32) -> (i32, i32, i32) {
    %c0_i32 = arith.constant 0 : i32
    %c0_i32_0 = arith.constant 0 : i32
    %c0_i32_1 = arith.constant 0 : i32
    return %arg0, %c0_i32, %c0_i32_0 : i32, i32, i32
  }
  func.func @transform_3(%arg0: i32) -> (i32, i32, i32) {
    %c0_i32 = arith.constant 0 : i32
    %c0_i32_0 = arith.constant 0 : i32
    %c0_i32_1 = arith.constant 0 : i32
    return %arg0, %c0_i32, %c0_i32_0 : i32, i32, i32
  }
  func.func @transform_4(%arg0: i32) -> (i32, i32, i32) {
    %c0_i32 = arith.constant 0 : i32
    %c0_i32_0 = arith.constant 0 : i32
    %c0_i32_1 = arith.constant 0 : i32
    return %arg0, %c0_i32, %c0_i32_0 : i32, i32, i32
  }
  func.func @transform_5(%arg0: i32) -> (i32, i32, i32) {
    %c0_i32 = arith.constant 0 : i32
    %c0_i32_0 = arith.constant 0 : i32
    %c0_i32_1 = arith.constant 0 : i32
    return %arg0, %c0_i32, %c0_i32_0 : i32, i32, i32
  }
  func.func @transform_6(%arg0: i32) -> (i32, i32, i32) {
    %c0_i32 = arith.constant 0 : i32
    %c0_i32_0 = arith.constant 0 : i32
    %c0_i32_1 = arith.constant 0 : i32
    return %arg0, %c0_i32, %c0_i32_0 : i32, i32, i32
  }
  func.func @transform_7(%arg0: i32) -> (i32, i32, i32) {
    %c0_i32 = arith.constant 0 : i32
    %c0_i32_0 = arith.constant 0 : i32
    %c0_i32_1 = arith.constant 0 : i32
    return %arg0, %c0_i32, %c0_i32_0 : i32, i32, i32
  }
  func.func @transform_8(%arg0: i32) -> (i32, i32, i32) {
    %c0_i32 = arith.constant 0 : i32
    %c0_i32_0 = arith.constant 0 : i32
    %c0_i32_1 = arith.constant 0 : i32
    return %arg0, %c0_i32, %c0_i32_0 : i32, i32, i32
  }
  func.func @transform_9(%arg0: i32) -> (i32, i32, i32) {
    %c0_i32 = arith.constant 0 : i32
    %c0_i32_0 = arith.constant 0 : i32
    %c0_i32_1 = arith.constant 0 : i32
    return %arg0, %c0_i32, %c0_i32_0 : i32, i32, i32
  }
  func.func @transform_10(%arg0: i32) -> (i32, i32, i32) {
    %c0_i32 = arith.constant 0 : i32
    %c0_i32_0 = arith.constant 0 : i32
    %c0_i32_1 = arith.constant 0 : i32
    return %arg0, %c0_i32, %c0_i32_0 : i32, i32, i32
  }
  func.func @transform_11(%arg0: i32) -> (i32, i32) {
    %c0_i32 = arith.constant 0 : i32
    %c0_i32_0 = arith.constant 0 : i32
    %c0_i32_1 = arith.constant 0 : i32
    return %c0_i32, %c0_i32_0 : i32, i32
  }
  func.func @transform_12(%arg0: i32) -> (i32, i32) {
    %c0_i32 = arith.constant 0 : i32
    %c0_i32_0 = arith.constant 0 : i32
    %c0_i32_1 = arith.constant 0 : i32
    return %c0_i32, %c0_i32_0 : i32, i32
  }
  func.func @transform_13(%arg0: i32) -> (i32, i32) {
    %c0_i32 = arith.constant 0 : i32
    %c0_i32_0 = arith.constant 0 : i32
    %c0_i32_1 = arith.constant 0 : i32
    return %c0_i32, %c0_i32_0 : i32, i32
  }
  func.func @transform_14(%arg0: i32) -> (i32, i32) {
    %c0_i32 = arith.constant 0 : i32
    %c0_i32_0 = arith.constant 0 : i32
    %c0_i32_1 = arith.constant 0 : i32
    return %c0_i32, %c0_i32_0 : i32, i32
  }
  func.func @transform_15(%arg0: i32) -> (i32, i32) {
    %c0_i32 = arith.constant 0 : i32
    %c0_i32_0 = arith.constant 0 : i32
    %c0_i32_1 = arith.constant 0 : i32
    return %c0_i32, %c0_i32_0 : i32, i32
  }
  func.func @transform_16(%arg0: i32) -> (i32, i32) {
    %c0_i32 = arith.constant 0 : i32
    %c0_i32_0 = arith.constant 0 : i32
    %c0_i32_1 = arith.constant 0 : i32
    return %c0_i32, %c0_i32_0 : i32, i32
  }
  func.func @transform_17(%arg0: i32) -> (i32, i32) {
    %c0_i32 = arith.constant 0 : i32
    %c0_i32_0 = arith.constant 0 : i32
    %c0_i32_1 = arith.constant 0 : i32
    return %c0_i32, %c0_i32_0 : i32, i32
  }
  func.func @transform_18(%arg0: i32) -> (i32, i32) {
    %c0_i32 = arith.constant 0 : i32
    %c0_i32_0 = arith.constant 0 : i32
    %c0_i32_1 = arith.constant 0 : i32
    return %c0_i32, %c0_i32_0 : i32, i32
  }
  func.func @transform_19(%arg0: i32) -> (i32, i32, i32) {
    %c0_i32 = arith.constant 0 : i32
    %c0_i32_0 = arith.constant 0 : i32
    %c0_i32_1 = arith.constant 0 : i32
    return %arg0, %c0_i32, %c0_i32_0 : i32, i32, i32
  }
  func.func @transform_20(%arg0: i32) -> (i32, i32, i32) {
    %c0_i32 = arith.constant 0 : i32
    %c0_i32_0 = arith.constant 0 : i32
    %c0_i32_1 = arith.constant 0 : i32
    return %arg0, %c0_i32, %c0_i32_0 : i32, i32, i32
  }
  func.func @transform_21(%arg0: i32) -> (i32, i32, i32) {
    %c0_i32 = arith.constant 0 : i32
    %c0_i32_0 = arith.constant 0 : i32
    %c0_i32_1 = arith.constant 0 : i32
    return %arg0, %c0_i32, %c0_i32_0 : i32, i32, i32
  }
  func.func @transform_22(%arg0: i32) -> (i32, i32, i32) {
    %c0_i32 = arith.constant 0 : i32
    %c0_i32_0 = arith.constant 0 : i32
    %c0_i32_1 = arith.constant 0 : i32
    return %arg0, %c0_i32, %c0_i32_0 : i32, i32, i32
  }
  func.func @transform_23(%arg0: i32) -> (i32, i32, i32) {
    %c0_i32 = arith.constant 0 : i32
    %c0_i32_0 = arith.constant 0 : i32
    %c0_i32_1 = arith.constant 0 : i32
    return %arg0, %c0_i32, %c0_i32_0 : i32, i32, i32
  }
  func.func @transform_24(%arg0: i32) -> (i32, i32, i32) {
    %c0_i32 = arith.constant 0 : i32
    %c0_i32_0 = arith.constant 0 : i32
    %c0_i32_1 = arith.constant 0 : i32
    return %arg0, %c0_i32, %c0_i32_0 : i32, i32, i32
  }
}

</mosaic_0001>

<bundles_post_ra>
// kernel: tri_block_forward.1
= control target key start
LH: loop header
LB: loop body
LE: loop exit
PB: predicated region body
PF: predicated region fallthrough
CT: control target
= control target key end

     0   :  { %s5089_s0 = inlined_call_operand.vmem [shape: f32[2,4,256], index: 0, kind: input, shape index: {}]   ;;  %s5090_s1 = inlined_call_operand.vmem [shape: f32[2,4,256], index: 1, kind: input, shape index: {}]   ;;  %s5091_s2 = inlined_call_operand.vmem [shape: f32[2,4,256], index: 2, kind: input, shape index: {}]   ;;  %s5092_s3 = inlined_call_operand.vmem [shape: f32[2,3,256], index: 3, kind: input, shape index: {}, may-alias: {3,22}]   ;;  %s5093_s4 = inlined_call_operand.vmem [shape: f32[2,3,256], index: 4, kind: input, shape index: {}, may-alias: {4,23}]   ;;  %s5094_s5 = inlined_call_operand.vmem [shape: f32[2,3,256], index: 5, kind: input, shape index: {}, may-alias: {5,24}]   ;;  %s5095_s6 = inlined_call_operand.vmem [shape: f32[2,4,3], index: 6, kind: input, shape index: {}]   ;;  %s5096_s7 = inlined_call_operand.vmem [shape: f32[2,8,3], index: 7, kind: input, shape index: {}]   ;;  %s5097_s8 = inlined_call_operand.vmem [shape: f32[2,8,3], index: 8, kind: input, shape index: {}]   ;;  %s5098_s9 = inlined_call_operand.vmem [shape: f32[2,8,3], index: 9, kind: input, shape index: {}]   ;;  %s5099_s10 = inlined_call_operand.vmem [shape: f32[2,8,3], index: 10, kind: input, shape index: {}]   ;;  %s5100_s11 = inlined_call_operand.vmem [shape: bf16[8,36], index: 11, kind: input, shape index: {}]   ;;  %s5101_s12 = inlined_call_operand.vmem [shape: bf16[8,72], index: 12, kind: input, shape index: {}]   ;;  %s5102_s13 = inlined_call_operand.vmem [shape: bf16[3,8], index: 13, kind: input, shape index: {}]   ;;  %s5103_s14 = inlined_call_operand.vmem [shape: f32[8,1], index: 14, kind: input, shape index: {}]   ;;  %s5104_s15 = inlined_call_operand.vmem [shape: f32[8,1], index: 15, kind: input, shape index: {}]   ;;  %s5105_s16 = inlined_call_operand.vmem [shape: f32[3,1], index: 16, kind: input, shape index: {}]   ;;  %s5106_s17 = inlined_call_operand.vmem [shape: f32[1,256], index: 17, kind: input, shape index: {}]   ;;  %s5107_s18 = inlined_call_operand.vmem [shape: f32[1,256], index: 18, kind: input, shape index: {}]   ;;  %s5108_s19 = inlined_call_operand.vmem [shape: f32[2,8,256], index: 19, kind: output, shape index: {0}]   ;;  %s5109_s20 = inlined_call_operand.vmem [shape: f32[2,8,256], index: 20, kind: output, shape index: {1}]   ;;  %s5110_s21 = inlined_call_operand.vmem [shape: f32[2,8,256], index: 21, kind: output, shape index: {2}]   ;;  %s5111_s22 = inlined_call_operand.vmem [shape: f32[2,3,256], index: 22, kind: output, shape index: {3}, may-alias: {3,22}]   ;;  %s5112_s23 = inlined_call_operand.vmem [shape: f32[2,3,256], index: 23, kind: output, shape index: {4}, may-alias: {4,23}]   ;;  %s5113_s24 = inlined_call_operand.vmem [shape: f32[2,3,256], index: 24, kind: output, shape index: {5}, may-alias: {5,24}]  }
   0x1   :  { %5166 = sst [smem:[#allocation7_spill]] %s5089_s0 }
   0x2   :  { %5167 = sst [smem:[#allocation8_spill]] %s5090_s1 }
   0x3   :  { %5168 = sst [smem:[#allocation9_spill]] %s5091_s2 }
   0x4   :  { %5169 = sst [smem:[#allocation10_spill]] %s5092_s3 }
   0x5   :  { %5170 = sst [smem:[#allocation11_spill]] %s5093_s4 }
   0x6   :  { %5171 = sst [smem:[#allocation12_spill]] %s5094_s5  ;;  %s3948_s5 = smov 0  }
   0x7   :  { %5172 = sst [smem:[#allocation13_spill]] %s5095_s6 }
   0x8   :  { %5173 = sst [smem:[#allocation14_spill]] %s5096_s7 }
   0x9   :  { %5174 = sst [smem:[#allocation15_spill]] %s5097_s8 }
   0xa LB: > { %5175 = sst [smem:[#allocation6_spill]] %s3808_s5  ;;  %s3503_s26 = sadd.s32 4294967295, %s3808_s5   ;;  %s3808_s5 = sphi %s3948_s5, %s35_s5  }
   0xb   : > { %p3507_p0 = scmp.ge.s32.totalorder %s3808_s5, 1  ;;  %p768_p1 = scmp.lt.s32.totalorder %s3808_s5, 3 }
   0xd   : > { %p769_p2 = pnand %p3507_p0, %p768_p1 }
   0xe   : > { %p904_p3 = scmp.lt.s32.totalorder (!%p769_p2), %s3503_s26, 1  ;;  %s5118_s27 = smov (!%p769_p2), 111  }
   0xf   : > { %772 = sbr.rel (%p769_p2) target bundleno = 1192 (0x4a8), region = 96  ;;  %s5176_s29 = sld [smem:[#allocation13_spill]] (!%p769_p2) }
  0x10   : > { %s5116_s7 = smov (!%p769_p2), 127   ;;  %s5114_s30 = smov (!%p769_p2), 112  }
  0x11   : > { %s5177_s4 = sld [smem:[#allocation9_spill]] (!%p769_p2)  ;;  %s5180_s25 = smov (!%p769_p2), 111  }
  0x12   : > { %s5178_s2 = sld [smem:[#allocation8_spill]] (!%p769_p2)  ;;  %s5126_s8 = smov (!%p769_p2), 16  }
  0x13   : > { %s5184_s5 = sld [smem:[#allocation15_spill]] (!%p769_p2) }
  0x14   : > { %v1753_v0 = vld [vmem:[#allocation2 + $0x1c] sm:$0xf]  ;;  %v3811_v1 = vmov 1   ;;  %v3812_v2 = vmov 2   ;;  %s5374_s26 = smov (!%p904_p3, %s3503_s26), 1  ;;  %v3813_v3 = vmov 0   ;;  %v985_v7 = vlaneseq }
  0x15   : > { %1791 = vrot.lane.b32.xlu1 %v1753_v0, %s5118_s27  ;;  %3662 = vset.pattern.permute.xlu0 %v3811_v1  ;;  %s3520_s28 = sshll.u32 %s5374_s26, 2  ;;  %v1525_v5 = vld [vmem:[#allocation2 + $0x1c] sm:$0xf]  ;;  %v3816_v8 = vmov 839922192   ;;  %s3975_s3 = sshll.u32 %s5374_s26, 3 }
  0x16   : > { %3664 = vset.pattern.permute.xlu1 %v3812_v2  ;;  %1922 = vmatprep.mubr.bf16.mxu0 %v3813_v3  ;;  %s937_s0 = scalar_lea.vmem %s5176_s29, %s3520_s28  ;;  %v1673_v6 = vld [vmem:[#allocation2 + $0x1c] sm:$0xf]  ;;  %v1171_v9 = vunpack.c.l.s4 %v3816_v8  ;;  %v3972_v11 = vshrl.u32 %v985_v7, 7  ;;  %s3821_s28 = smov 15   ;;  %v2079_v42 = vld [vmem:[%s5103_s14] sm:$0xff]  ;;  %v4103_v58 = vand.u32 127, %v985_v7 }
  0x17   : > { %1963 = vmatprep.mubr.bf16.mxu1 %v3813_v3  ;;  %v1160_v4 = vld [vmem:[%s937_s0] sm:$0xf]  ;;  %s918_s1 = scalar_lea.vmem %s5177_s4, %s3975_s3  ;;  %s5120_s4 = smov 1   ;;  %v1605_v34 = vld [vmem:[#allocation2 + $0x1c] sm:$0xf]  ;;  %vm5133_vm0 = vcmask 1039360  }
  0x18   : > { %1182 = vperm.xlu0 %3662, %v1160_v4   ;;  %v1172_v10 = vunpack.c.0.s8 %v1171_v9  ;;  %s913_s29 = scalar_lea.vmem %s5178_s2, %s3975_s3  ;;  %v1194_v15 = vld [vmem:[%s918_s1] sm:$0xff]  ;;  %s5124_s1 = smov 17   ;;  %v4110_v61 = vadd.s32 256, %v4103_v58  ;;  %v989_v62 = vadd.s32 384, %v4103_v58  ;;  %v4116_v0 = vadd.s32 128, %v4103_v58 }
  0x19   : > { %1196 = vperm.xlu1 %3664, %v1160_v4   ;;  %v1180_v17 = vld [vmem:[%s913_s29] sm:$0xff]  ;;  %s5183_s29 = sld [smem:[#allocation14_spill]]  ;;  %s945_s6 = scalar_lea.vmem %s5184_s5, %s3975_s3  ;;  %vm5131_vm5 = vcmask 924672   ;;  %vm5134_vm8 = vcmask 7168   ;;  %vm5132_vm14 = vcmask 138240  }
  0x1a   : > { %v3980_v13 = vsub.s32 %v1172_v10, %v3972_v11  ;;  %v1162_v45 = vld [vmem:[%s945_s6] sm:$0xff]  ;;  %v1003_v8 = vand.u32 15, %v4116_v0  ;;  %v1075_v9 = vand.u32 255, %v4116_v0  ;;  %s5261_s2 = smov 1   ;;  %s5371_s6 = sld [smem:[#allocation12_spill]] }
  0x1c   : > { %3663 = vset.pattern.permute.xlu0 %v3813_v3  ;;  %vm4136_vm3 = vcmp.ge.s32.totalorder %v1003_v8, 1  ;;  %vm4140_vm4 = vcmp.lt.s32.totalorder %v1075_v9, 240  ;;  %v5199_v9 = vmov 0 }
  0x1d   : > { %1557 = vrot.lane.b32.xlu1 %v1525_v5, %s5116_s7  ;;  %1168 = vperm.xlu0 %3663, %v1160_v4   ;;  %s5179_s7 = sld [smem:[#allocation7_spill]]  ;;  %v1010_v5 = vand.u32 15, %v4110_v61  ;;  %vm5129_vm7 = vmand %vm4140_vm4, %vm4136_vm3 }
  0x1e   : > { %3665 = vset.pattern.permute.xlu1 %v3811_v1 }
  0x1f   : > { %s941_s0 = scalar_lea.vmem %s5183_s29, %s3975_s3  ;;  %vm4125_vm1 = vcmp.lt.s32.totalorder %v1010_v5, 15  ;;  %vm4190_vm11 = vcmp.ge.s32.totalorder %v1010_v5, 1 }
  0x20   : > { %v1161_v40 = vld [vmem:[%s941_s0] sm:$0xff]  ;;  %v5200_v9 = vsel %vm4190_vm11, 4294967295, %v5199_v9  ;;  %s933_s5 = scalar_lea.vmem %s5371_s6, %s3975_s3 }
  0x21   : > { %1705 = vrot.lane.b32.xlu1 %v1673_v6, %s5114_s30  ;;  %s5182_s30 = smov 112   ;;  %v1017_v6 = vand.u32 15, %v989_v62 }
  0x23   : > { %s908_s27 = scalar_lea.vmem %s5179_s7, %s3975_s3  ;;  %s5181_s7 = smov 127   ;;  %vm4129_vm2 = vcmp.lt.s32.totalorder %v1017_v6, 15  ;;  %vm4174_vm9 = vcmp.ge.s32.totalorder %v1017_v6, 1 }
  0x24   : > { %v1165_v25 = vld [vmem:[%s908_s27] sm:$0xff]  ;;  %s5122_s27 = smov 113  }
  0x87   : > { %v3977_v12 = vpop.permute.xlu1 %1791 }
  0x93   : > { %v1183_v16 = vpop.permute.xlu0 %1182 }
  0x94   : > { %v1197_v14 = vpop.permute.xlu1 %1196  ;;  %v1190_v19 = vrot.slane %v1183_v16, %v3980_v13  ;;  %v996_v16 = vand.u32 15, %v4103_v58 }
  0x95   : > { %v1204_v18 = vrot.slane %v1197_v14, %v3980_v13 }
  0x96   : > { %v1192_v21 = vmul.f32 %v1190_v19, %v1180_v17  ;;  %vm4154_vm6 = vcmp.ge.s32.totalorder %v996_v16, 1 }
  0x97   : > { %v1206_v20 = vmul.f32 %v1204_v18, %v1194_v15  ;;  %v5187_v15 = vmov 0  ;;  %v5189_v18 = vmov 0 }
  0x98   : > { %1193 = vst [vmem:[#allocation2 + $0xc] sm:$0xff] %v1192_v21  ;;  %v1511_v23 = vcombine.high %v1192_v21, %v1192_v21  ;;  %1518 = vst [vmem:[#allocation3 + $0x70] sm:$0xf] %v1192_v21  ;;  %v1169_v24 = vpop.permute.xlu0 %1168  ;;  %1783 = vrot.lane.b32.xlu0 %v1192_v21, %s5180_s25  ;;  %v4061_v41 = vpop.permute.xlu1 %1557  ;;  %v5188_v15 = vsel %vm4129_vm2, 4294967295, %v5187_v15  ;;  %v5190_v18 = vsel %vm4136_vm3, 4294967295, %v5189_v18 }
  0x99   : > { %1207 = vst [vmem:[#allocation2 + $0x14] sm:$0xff] %v1206_v20  ;;  %v3996_v22 = vcombine.high %v1206_v20, %v1206_v20  ;;  %1520 = vst [vmem:[#allocation3 + $0x8] sm:$0xf] %v1206_v20  ;;  %v1176_v26 = vrot.slane %v1169_v24, %v3980_v13 }
  0x9a   : > { %1519 = vst [vmem:[#allocation3 + $0x40] sm:$0xf] %v1511_v23 }
  0x9b   : > { %1521 = vst [vmem:[#allocation3 + $0x78] sm:$0xf] %v3996_v22  ;;  %v1178_v27 = vmul.f32 %v1176_v26, %v1165_v25 }
  0x9c   : > { %1549 = vrot.lane.b32.xlu0 %v1192_v21, %s5181_s7  ;;  %v4070_v43 = vpop.permute.xlu1 %1705 }
  0x9d   : > { %1179 = vst [vmem:[#allocation2 + $0x4] sm:$0xff] %v1178_v27  ;;  %v1510_v28 = vcombine.high %v1178_v27, %v1178_v27  ;;  %1516 = vst [vmem:[#allocation3 + $0x60] sm:$0xf] %v1178_v27  ;;  %1779 = vrot.lane.b32.xlu1 %v1178_v27, %s5180_s25 }
  0x9f   : > { %1517 = vst [vmem:[#allocation3 + $0xa8] sm:$0xf] %v1510_v28 }
  0xa0   : > { %1697 = vrot.lane.b32.xlu0 %v1192_v21, %s5182_s30  ;;  %v1278_v31 = vld [vmem:[#allocation2 + $0x10] sm:$0xff]  ;;  %v1427_v36 = vld [vmem:[#allocation2 + $0x18] sm:$0xf] }
  0xa1   : > { %1545 = vrot.lane.b32.xlu1 %v1178_v27, %s5181_s7  ;;  %v1298_v35 = vcombine.high %v1278_v31, %v1278_v31  ;;  %v1279_v37 = vld [vmem:[#allocation2 + $0x18] sm:$0xf] }
  0xa2   : > { %v1211_v38 = vld [vmem:[#allocation2 + $0x18] sm:$0xf] }
  0xa3   : > { %v1359_v39 = vld [vmem:[#allocation2 + $0x18] sm:$0xf] }
  0xa4   : > { %1787 = vrot.lane.b32.xlu0 %v1206_v20, %s5180_s25  ;;  %v1276_v29 = vld [vmem:[#allocation2] sm:$0xff]  ;;  %v1425_v30 = vld [vmem:[#allocation2 + $0x8] sm:$0xff] }
  0xa5   : > { %1553 = vrot.lane.b32.xlu1 %v1206_v20, %s5181_s7  ;;  %v1296_v32 = vcombine.high %v1276_v29, %v1276_v29  ;;  %v1445_v33 = vcombine.high %v1425_v30, %v1425_v30 }
  0xa8   : > { %1693 = vrot.lane.b32.xlu0 %v1178_v27, %s5182_s30 }
  0xa9   : > { %1635 = vrot.lane.b32.xlu1 %v1192_v21, %s5122_s27 }
  0xac   : > { %1701 = vrot.lane.b32.xlu0 %v1206_v20, %s5182_s30 }
  0xad   : > { %1631 = vrot.lane.b32.xlu1 %v1178_v27, %s5122_s27  ;;  %v5193_v27 = vmov 0 }
  0xae   : > { %v5194_v27 = vsel %vm4154_vm6, 4294967295, %v5193_v27 }
  0xb0   : > { %1299 = vrot.lane.b32.xlu0 %v1276_v29, %s5126_s8 }
  0xb1   : > { %1451 = vrot.lane.b32.xlu1 %v1425_v30, %s5120_s4 }
  0xb4   : > { %1303 = vrot.lane.b32.xlu0 %v1425_v30, %s5126_s8 }
  0xb5   : > { %1639 = vrot.lane.b32.xlu1 %v1206_v20, %s5122_s27 }
  0xb8   : > { %1237 = vrot.lane.b32.xlu0 %v1276_v29, %s5124_s1 }
  0xb9   : > { %1447 = vrot.lane.b32.xlu1 %v1276_v29, %s5120_s4 }
  0xbc   : > { %1307 = vrot.lane.b32.xlu0 %v1278_v31, %s5126_s8 }
  0xbd   : > { %1241 = vrot.lane.b32.xlu1 %v1425_v30, %s5124_s1 }
  0xc0   : > { %1551 = vrot.lane.b32.xlu0 %v1511_v23, %s5181_s7 }
  0xc1   : > { %1389 = vrot.lane.b32.xlu1 %v1425_v30, %s3821_s28 }
  0xc4   : > { %1633 = vrot.lane.b32.xlu0 %v1510_v28, %s5122_s27 }
  0xc5   : > { %1455 = vrot.lane.b32.xlu1 %v1278_v31, %s5120_s4 }
  0xc8   : > { %1449 = vrot.lane.b32.xlu0 %v1296_v32, %s5120_s4 }
  0xc9   : > { %1385 = vrot.lane.b32.xlu1 %v1276_v29, %s3821_s28  ;;  %v1089_v29 = vand.u32 255, %v989_v62 }
  0xcb   : > { %vm4178_vm10 = vcmp.lt.s32.totalorder %v1089_v29, 240 }
  0xcc   : > { %1637 = vrot.lane.b32.xlu0 %v1511_v23, %s5122_s27  ;;  %vm5130_vm12 = vmand %vm4178_vm10, %vm4174_vm9 }
  0xcd   : > { %1245 = vrot.lane.b32.xlu1 %v1278_v31, %s5124_s1 }
  0xd0   : > { %1239 = vrot.lane.b32.xlu0 %v1296_v32, %s5124_s1 }
  0xd1   : > { %1393 = vrot.lane.b32.xlu1 %v1278_v31, %s3821_s28 }
  0xd4   : > { %1387 = vrot.lane.b32.xlu0 %v1296_v32, %s3821_s28 }
  0xd5   : > { %1781 = vrot.lane.b32.xlu1 %v1510_v28, %s5180_s25 }
  0xd8   : > { %1453 = vrot.lane.b32.xlu0 %v1445_v33, %s5120_s4 }
  0xd9   : > { %1547 = vrot.lane.b32.xlu1 %v1510_v28, %s5181_s7 }
  0xdc   : > { %1243 = vrot.lane.b32.xlu0 %v1445_v33, %s5124_s1 }
  0xdd   : > { %1695 = vrot.lane.b32.xlu1 %v1510_v28, %s5182_s30 }
  0xe0   : > { %1391 = vrot.lane.b32.xlu0 %v1445_v33, %s3821_s28 }
  0xe1   : > { %1785 = vrot.lane.b32.xlu1 %v1511_v23, %s5180_s25 }
  0xe4   : > { %1789 = vrot.lane.b32.xlu0 %v3996_v22, %s5180_s25 }
  0xe5   : > { %1699 = vrot.lane.b32.xlu1 %v1511_v23, %s5182_s30 }
  0xe8   : > { %1555 = vrot.lane.b32.xlu0 %v3996_v22, %s5181_s7 }
  0xe9   : > { %1301 = vrot.lane.b32.xlu1 %v1296_v32, %s5126_s8 }
  0xec   : > { %1703 = vrot.lane.b32.xlu0 %v3996_v22, %s5182_s30 }
  0xed   : > { %1305 = vrot.lane.b32.xlu1 %v1445_v33, %s5126_s8 }
  0xf0   : > { %1641 = vrot.lane.b32.xlu0 %v3996_v22, %s5122_s27 }
  0xf1   : > { %1643 = vrot.lane.b32.xlu1 %v1605_v34, %s5122_s27 }
  0xf4   : > { %1457 = vrot.lane.b32.xlu0 %v1298_v35, %s5120_s4 }
  0xf5   : > { %1459 = vrot.lane.b32.xlu1 %v1427_v36, %s5120_s4  ;;  %v5195_v36 = vmov 0  ;;  %s5259_s4 = smov 17  }
  0xf6   : > { %v5196_v36 = vsel %vm4174_vm9, 4294967295, %v5195_v36 }
  0xf8   : > { %1309 = vrot.lane.b32.xlu0 %v1298_v35, %s5126_s8 }
  0xf9   : > { %1311 = vrot.lane.b32.xlu1 %v1279_v37, %s5126_s8  ;;  %s5258_s8 = smov 16  }
  0xfc   : > { %1247 = vrot.lane.b32.xlu0 %v1298_v35, %s5124_s1 }
  0xfd   : > { %1249 = vrot.lane.b32.xlu1 %v1211_v38, %s5124_s1  ;;  %v1068_v38 = vand.u32 255, %v4103_v58  ;;  %s5260_s1 = smov 113  }
  0xff   : > { %vm4198_vm13 = vcmp.ge.s32.totalorder %v1068_v38, 16 }
 0x100   : > { %1395 = vrot.lane.b32.xlu0 %v1298_v35, %s3821_s28  ;;  %vm5135_vm15 = vmand %vm4198_vm13, %vm4154_vm6 }
 0x101   : > { %1397 = vrot.lane.b32.xlu1 %v1359_v39, %s3821_s28 }
 0x104   : > { %2015 = vperm.xlu0 %3663, %v1161_v40  }
 0x105   : > { %2060 = vperm.xlu1 %3665, %v1161_v40  }
 0x108   : > { %2082 = vperm.xlu0 %3663, %v2079_v42  }
 0x109   : > { %3666 = vset.pattern.permute.xlu1 %v3813_v3 }
 0x10a   : > { %v4073_v44 = vpop.permute.xlu0 %1783  ;;  %2037 = vperm.xlu1 %3666, %v2079_v42  }
 0x10c   : > { %3667 = vset.pattern.permute.xlu0 %v3811_v1 }
 0x10d   : > { %2096 = vperm.xlu0 %3667, %v1162_v45  }
 0x10e   : > { %v4076_v46 = vpop.permute.xlu0 %1549  ;;  %2052 = vperm.xlu1 %3666, %v1162_v45  }
 0x10f   : > { %v4078_v47 = vpop.permute.xlu1 %1779 }
 0x111   : > { %3670 = vset.pattern.permute.xlu0 %v3812_v2 }
 0x112   : > { %v4081_v48 = vpop.permute.xlu0 %1697  ;;  %3668 = vset.pattern.permute.xlu1 %v3812_v2  ;;  %2140 = vperm.xlu0 %3670, %v1162_v45  }
 0x113   : > { %v4084_v49 = vpop.permute.xlu1 %1545  ;;  %2104 = vperm.xlu1 %3668, %v1161_v40  }
 0x116   : > { %v4086_v50 = vpop.permute.xlu0 %1787  ;;  %3791 = vset.pattern.permute.xlu0 %v3813_v3 }
 0x117   : > { %v4089_v51 = vpop.permute.xlu1 %1553  ;;  %3669 = vset.pattern.permute.xlu1 %v3813_v3 }
 0x118   : > { %2126 = vperm.xlu1 %3669, %v2079_v42  }
 0x11a   : > { %v4092_v52 = vpop.permute.xlu0 %1693 }
 0x11b   : > { %v4094_v53 = vpop.permute.xlu1 %1635 }
 0x11e   : > { %v4096_v54 = vpop.permute.xlu0 %1701 }
 0x11f   : > { %v1632_v55 = vpop.permute.xlu1 %1631 }
 0x122   : > { %v4098_v56 = vpop.permute.xlu0 %1299 }
 0x123   : > { %v4100_v57 = vpop.permute.xlu1 %1451 }
 0x126   : > { %v4105_v59 = vpop.permute.xlu0 %1303 }
 0x127   : > { %v4107_v60 = vpop.permute.xlu1 %1639 }
 0x12a   : > { %v4113_v63 = vpop.permute.xlu0 %1237 }
 0x12b   : > { %v1448_v4 = vpop.permute.xlu1 %1447 }
 0x12e   : > { %v4119_v7 = vpop.permute.xlu0 %1307 }
 0x12f   : > { %v4123_v10 = vpop.permute.xlu1 %1241 }
 0x132   : > { %v1552_v17 = vpop.permute.xlu0 %1551 }
 0x133   : > { %v1562_v20 = vsel %vm5133_vm0, %v4076_v46, %v1552_v17  ;;  %v1563_v21 = vsel %vm5133_vm0, %v1552_v17, %v4089_v51  ;;  %v4148_v22 = vpop.permute.xlu1 %1389  ;;  %vm5137_vm0 = vcmask 908288  }
 0x134   : > { %v1574_v23 = vsel %vm4125_vm1, %v1562_v20, 0.0  ;;  %v1575_v24 = vsel %vm4129_vm2, %v1563_v21, 0.0 }
 0x135   : > { %v1586_v25 = vrot.slane %v1574_v23, 4  ;;  %v1587_v26 = vrot.slane %v1575_v24, 4 }
 0x136   : > { %v1634_v28 = vpop.permute.xlu0 %1633 }
 0x137   : > { %1598 = vst [vmem:[#allocation3 + $0x70] sm:$0xf0] %v1586_v25  ;;  %1599 = vst [vmem:[#allocation3 + $0x40] sm:$0xf0] %v1587_v26  ;;  %v1646_v30 = vsel %vm5131_vm5, %v1632_v55, %v1634_v28  ;;  %v1647_v31 = vsel %vm5131_vm5, %v1634_v28, %v4094_v53  ;;  %v4165_v32 = vpop.permute.xlu1 %1455 }
 0x138   : > { %v1658_v33 = vsel %vm4154_vm6, %v1646_v30, 0.0  ;;  %v1659_v34 = vsel %vm5129_vm7, %v1647_v31, 0.0  ;;  %vm4219_vm7 = vcmp.lt.s32.totalorder %v996_v16, 15 }
 0x139   : > { %1664 = vst [vmem:[#allocation3 + $0xc0] sm:$0xf] %v1658_v33  ;;  %1665 = vst [vmem:[#allocation3 + $0x10] sm:$0xf] %v1659_v34 }
 0x13a   : > { %v1450_v35 = vpop.permute.xlu0 %1449 }
 0x13b   : > { %v1462_v39 = vsel %vm5134_vm8, %v1448_v4, %v1450_v35  ;;  %v1463_v40 = vsel %vm5134_vm8, %v1450_v35, %v4100_v57  ;;  %v1386_v42 = vpop.permute.xlu1 %1385  ;;  %v4255_v35 = vadd.s32 640, %v4103_v58 }
 0x13c   : > { %v1474_v45 = vsel %vm4154_vm6, %v1462_v39, 0.0  ;;  %v1475_v55 = vsel %vm4136_vm3, %v1463_v40, 0.0 }
 0x13d   : > { %v1486_v62 = vrot.slane %v1474_v45, 4  ;;  %v1487_v6 = vrot.slane %v1475_v55, 4 }
 0x13e   : > { %v1638_v4 = vpop.permute.xlu0 %1637 }
 0x13f   : > { %1498 = vst [vmem:[#allocation3 + $0x30] sm:$0xf0] %v1486_v62  ;;  %1499 = vst [vmem:[#allocation3 + $0x48] sm:$0xf0] %v1487_v6  ;;  %v1648_v20 = vsel %vm5131_vm5, %v4094_v53, %v1638_v4  ;;  %v1649_v5 = vsel %vm5131_vm5, %v1638_v4, %v4107_v60  ;;  %v4206_v21 = vpop.permute.xlu1 %1245  ;;  %vm5138_vm5 = vcmask 121856   ;;  %v5207_v62 = vmov 0 }
 0x140   : > { %v1660_v23 = vsel %vm4190_vm11, %v1648_v20, 0.0  ;;  %v1661_v24 = vsel %vm5130_vm12, %v1649_v5, 0.0  ;;  %vm4231_vm12 = vcmp.lt.s32.totalorder %v1003_v8, 15  ;;  %v1082_v8 = vand.u32 255, %v4110_v61 }
 0x141   : > { %1666 = vst [vmem:[#allocation3 + $0x38] sm:$0xf] %v1660_v23  ;;  %1667 = vst [vmem:[#allocation3 + $0x28] sm:$0xf] %v1661_v24  ;;  %v4284_v20 = vadd.s32 512, %v4103_v58  ;;  %v1031_v5 = vand.u32 15, %v4255_v35 }
 0x142   : > { %v1240_v53 = vpop.permute.xlu0 %1239  ;;  %vm5139_vm8 = vmand %vm4140_vm4, %vm4231_vm12 }
 0x143   : > { %v1252_v26 = vsel %vm5132_vm14, %v4113_v63, %v1240_v53  ;;  %v1253_v28 = vsel %vm5132_vm14, %v1240_v53, %v4123_v10  ;;  %v4227_v29 = vpop.permute.xlu1 %1393  ;;  %vm5136_vm14 = vmand %vm4198_vm13, %vm4219_vm7 }
 0x144   : > { %v1264_v16 = vsel %vm5135_vm15, %v1252_v26, 0.0  ;;  %v1265_v63 = vsel %vm4136_vm3, %v1253_v28, 0.0  ;;  %vm4275_vm15 = vcmp.ge.s32.totalorder %v1082_v8, 16 }
 0x145   : > { %1270 = vst [vmem:[#allocation3 + $0xb0] sm:$0xf] %v1264_v16  ;;  %1271 = vst [vmem:[#allocation3] sm:$0xf] %v1265_v63  ;;  %v5208_v62 = vsel %vm4275_vm15, 4294967295, %v5207_v62 }
 0x146   : > { %v1388_v0 = vpop.permute.xlu0 %1387 }
 0x147   : > { %v1400_v31 = vsel %vm5138_vm5, %v1386_v42, %v1388_v0  ;;  %v1401_v33 = vsel %vm5138_vm5, %v1388_v0, %v4148_v22  ;;  %v1782_v34 = vpop.permute.xlu1 %1781 }
 0x148   : > { %v1412_v38 = vsel %vm5136_vm14, %v1400_v31, 0.0  ;;  %v1413_v39 = vsel %vm4231_vm12, %v1401_v33, 0.0  ;;  %v1794_v61 = vsel %vm5137_vm0, %v4078_v47, %v1782_v34  ;;  %v1795_v40 = vsel %vm5137_vm0, %v1782_v34, %v4073_v44 }
 0x149   : > { %1418 = vst [vmem:[#allocation3 + $0x30] sm:$0xf] %v1412_v38  ;;  %1419 = vst [vmem:[#allocation3 + $0x48] sm:$0xf] %v1413_v39  ;;  %v1806_v42 = vsel %vm4219_vm7, %v1794_v61, 0.0  ;;  %v1807_v45 = vsel %vm5139_vm8, %v1795_v40, 0.0 }
 0x14a   : > { %1812 = vst [vmem:[#allocation3 + $0x58] sm:$0xf] %v1806_v42  ;;  %1813 = vst [vmem:[#allocation3 + $0xd0] sm:$0xf] %v1807_v45  ;;  %v1454_v55 = vpop.permute.xlu0 %1453  ;;  %vm5209_vm0 = vcmask 7168   ;;  %vm5211_vm8 = vcmask 1039360  }
 0x14b   : > { %v1464_v47 = vsel %vm5209_vm0, %v4100_v57, %v1454_v55  ;;  %vm5210_vm5 = vmmov %vm5209_vm0  ;;  %v1548_v4 = vpop.permute.xlu1 %1547  ;;  %v1024_v34 = vand.u32 15, %v4284_v20 }
 0x14c   : > { %v1465_v6 = vsel %vm5210_vm5, %v1454_v55, %v4165_v32  ;;  %v1476_v23 = vsel %vm4190_vm11, %v1464_v47, 0.0  ;;  %v1560_v53 = vsel %vm5211_vm8, %v4084_v49, %v1548_v4  ;;  %vm5212_vm0 = vmmov %vm5211_vm8  ;;  %v1103_v49 = vand.u32 255, %v4255_v35 }
 0x14d   : > { %v1477_v24 = vsel %vm4174_vm9, %v1465_v6, 0.0  ;;  %v1561_v57 = vsel %vm5212_vm0, %v1548_v4, %v4076_v46  ;;  %v1488_v26 = vrot.slane %v1476_v23, 4  ;;  %v1572_v58 = vsel %vm4219_vm7, %v1560_v53, 0.0  ;;  %vm5217_vm8 = vmand %vm4275_vm15, %vm4190_vm11 }
 0x14e   : > { %v1489_v28 = vrot.slane %v1477_v24, 4  ;;  %v1573_v16 = vsel %vm4231_vm12, %v1561_v57, 0.0  ;;  %v1584_v63 = vrot.slane %v1572_v58, 4  ;;  %v1244_v8 = vpop.permute.xlu0 %1243  ;;  %vm5213_vm0 = vcmask 138240  }
 0x14f   : > { %v1585_v0 = vrot.slane %v1573_v16, 4  ;;  %1500 = vst [vmem:[#allocation3 + $0x80] sm:$0xf0] %v1488_v26  ;;  %v1254_v46 = vsel %vm5213_vm0, %v4123_v10, %v1244_v8  ;;  %vm5214_vm14 = vmmov %vm5213_vm0  ;;  %v1696_v33 = vpop.permute.xlu1 %1695  ;;  %vm4311_vm5 = vcmp.lt.s32.totalorder %v1031_v5, 15  ;;  %vm5222_vm11 = vcmask 121856  }
 0x150   : > { %1501 = vst [vmem:[#allocation3 + $0x88] sm:$0xf0] %v1489_v28  ;;  %v1255_v31 = vsel %vm5214_vm14, %v1244_v8, %v4206_v21  ;;  %1596 = vst [vmem:[#allocation3 + $0x60] sm:$0xf0] %v1584_v63  ;;  %v1266_v10 = vsel %vm5217_vm8, %v1254_v46, 0.0  ;;  %vm5218_vm14 = vcmask 916480  }
 0x151   : > { %1597 = vst [vmem:[#allocation3 + $0xa8] sm:$0xf0] %v1585_v0  ;;  %v1267_v39 = vsel %vm4174_vm9, %v1255_v31, 0.0  ;;  %v1708_v61 = vsel %vm5218_vm14, %v4092_v52, %v1696_v33  ;;  %vm5219_vm0 = vmmov %vm5218_vm14  ;;  %v1844_v55 = vld [vmem:[#allocation3 + $0xd0] sm:$0xf]  ;;  %vm5225_vm9 = vcmask 908288  }
 0x152   : > { %v1709_v40 = vsel %vm5219_vm0, %v1696_v33, %v4081_v48  ;;  %1272 = vst [vmem:[#allocation3 + $0xd8] sm:$0xf] %v1266_v10  ;;  %1273 = vst [vmem:[#allocation3 + $0x18] sm:$0xf] %v1267_v39  ;;  %v1732_v45 = vrot.slane %v1708_v61, 4  ;;  %v1392_v4 = vpop.permute.xlu0 %1391  ;;  %v1862_v52 = vpack.c.bf16 %v1844_v55, %v1844_v55  ;;  %vm4336_vm0 = vcmp.lt.s32.totalorder %v1103_v49, 240 }
 0x153   : > { %v1721_v42 = vsel %vm4140_vm4, %v1709_v40, 0.0  ;;  %v1843_v47 = vld [vmem:[#allocation3 + $0x58] sm:$0xf]  ;;  %v1402_v53 = vsel %vm5222_vm11, %v4148_v22, %v1392_v4  ;;  %vm5223_vm8 = vmmov %vm5222_vm11  ;;  %v1786_v26 = vpop.permute.xlu1 %1785  ;;  %vm5227_vm11 = vcmask 1041408   ;;  %vm4364_vm3 = vcmp.lt.s32.totalorder %v1024_v34, 15 }
 0x154   : > { %v1733_v6 = vrot.slane %v1721_v42, 4  ;;  %v1861_v23 = vpack.c.bf16 %v1843_v47, %v1843_v47  ;;  %1744 = vst [vmem:[#allocation3 + $0xc0] sm:$0xf0] %v1732_v45  ;;  %v1403_v57 = vsel %vm5223_vm8, %v1392_v4, %v4227_v29  ;;  %vm5224_vm14 = vmand %vm4275_vm15, %vm4125_vm1  ;;  %v1796_v16 = vsel %vm5225_vm9, %v4073_v44, %v1786_v26  ;;  %3537 = vmatprep.subr.msk.bf16.mxu0 %vm5227_vm11, %v1862_v52 }
 0x155   : > { %v1414_v28 = vsel %vm5224_vm14, %v1402_v53, 0.0  ;;  %v1415_v58 = vsel %vm4129_vm2, %v1403_v57, 0.0  ;;  %vm5226_vm6 = vmmov %vm5225_vm9  ;;  %v1808_v63 = vsel %vm4125_vm1, %v1796_v16, 0.0  ;;  %v5230_v44 = vmov 0 }
 0x156   : > { %1745 = vst [vmem:[#allocation3 + $0x10] sm:$0xf0] %v1733_v6  ;;  %v1797_v22 = vsel %vm5226_vm6, %v1786_v26, %v4086_v50  ;;  %1420 = vst [vmem:[#allocation3 + $0x80] sm:$0xf] %v1414_v28  ;;  %v5231_v44 = vsel %vm4364_vm3, 4294967295, %v5230_v44  ;;  %v1790_v49 = vpop.permute.xlu0 %1789  ;;  %v5237_v4 = vmov 0 }
 0x157   : > { %1421 = vst [vmem:[#allocation3 + $0x88] sm:$0xf] %v1415_v58  ;;  %vm5228_vm8 = vmand %vm4178_vm10, %vm4129_vm2  ;;  %v1798_v46 = vsel %vm5225_vm9, %v4086_v50, %v1790_v49  ;;  %v1700_v33 = vpop.permute.xlu1 %1699  ;;  %vm5242_vm2 = vcmask 1041408  }
 0x158   : > { %v1809_v0 = vsel %vm5228_vm8, %v1797_v22, 0.0  ;;  %vm5229_vm14 = vmmov %vm5227_vm11  ;;  %1814 = vst [vmem:[#allocation3 + $0x98] sm:$0xf] %v1808_v63  ;;  %v1810_v10 = vsel %vm4364_vm3, %v1798_v46, 0.0  ;;  %vm5233_vm8 = vcmask 916480  }
 0x159   : > { %v1873_v8 = vsel %vm5229_vm14, %v1861_v23, 0  ;;  %vm5148_vm6 = vmand %vm4336_vm0, %vm4311_vm5  ;;  %1815 = vst [vmem:[#allocation3 + $0xc8] sm:$0xf] %v1809_v0  ;;  %v1710_v61 = vsel %vm5233_vm8, %v4081_v48, %v1700_v33 }
 0x15a   : > { %1901 = vmatpush1.bf16.msra.mxu0 %v1873_v8  ;;  %vm5232_vm11 = vmmov %vm5225_vm9  ;;  %1816 = vst [vmem:[#allocation3 + $0xe0] sm:$0xf] %v1810_v10  ;;  %v1734_v50 = vrot.slane %v1710_v61, 4  ;;  %vm5154_vm9 = vcmask 130048   ;;  %v1556_v45 = vpop.permute.xlu0 %1555  ;;  %v1831_v8 = vld [vmem:[#allocation3 + $0x60] sm:$0xff] }
 0x15b   : > { %v1799_v31 = vsel %vm5232_vm11, %v1790_v49, %v3977_v12  ;;  %vm5234_vm14 = vmmov %vm5233_vm8  ;;  %vm5235_vm11 = vcmask 1039360   ;;  %v1302_v48 = vpop.permute.xlu1 %1301  ;;  %vm4393_vm8 = vcmp.ge.s32.totalorder %v1024_v34, 1  ;;  %v1837_v57 = vld [vmem:[#allocation3 + $0xc0] sm:$0xff] }
 0x15c   : > { %v1811_v39 = vsel %vm5148_vm6, %v1799_v31, 0.0  ;;  %v1711_v40 = vsel %vm5234_vm14, %v1700_v33, %v4096_v54  ;;  %1746 = vst [vmem:[#allocation3 + $0x38] sm:$0xf0] %v1734_v50  ;;  %v1564_v55 = vsel %vm5235_vm11, %v4089_v51, %v1556_v45  ;;  %vm5236_vm6 = vmmov %vm5235_vm11  ;;  %v5238_v4 = vsel %vm4393_vm8, 4294967295, %v5237_v4 }
 0x15d   : > { %1817 = vst [vmem:[#allocation3 + $0x20] sm:$0xf] %v1811_v39  ;;  %v1723_v12 = vsel %vm4178_vm10, %v1711_v40, 0.0  ;;  %v1565_v47 = vsel %vm5236_vm6, %v1556_v45, %v4061_v41  ;;  %v1838_v6 = vld [vmem:[#allocation3 + $0x10] sm:$0xff]  ;;  %v1576_v52 = vsel %vm4364_vm3, %v1564_v55, 0.0  ;;  %v1314_v53 = vsel %vm5154_vm9, %v4098_v56, %v1302_v48  ;;  %v1832_v41 = vld [vmem:[#allocation3 + $0xa8] sm:$0xff]  ;;  %vm5241_vm11 = vmmov %vm5234_vm14 }
 0x15e   : > { %v1735_v42 = vrot.slane %v1723_v12, 4  ;;  %v1577_v23 = vsel %vm4311_vm5, %v1565_v47, 0.0  ;;  %v1315_v51 = vsel %vm5154_vm9, %v1302_v48, %v4105_v59  ;;  %v1588_v26 = vrot.slane %v1576_v52, 4  ;;  %v1704_v0 = vpop.permute.xlu0 %1703 }
 0x15f   : > { %v1589_v34 = vrot.slane %v1577_v23, 4  ;;  %v1326_v28 = vsel %vm4198_vm13, %v1314_v53, 0.0  ;;  %v1339_v58 = vrot.slane %v1315_v51, 4  ;;  %v1856_v63 = vpack.c.bf16 %v1838_v6, %v1832_v41  ;;  %v1845_v46 = vld [vmem:[#allocation3 + $0x98] sm:$0xf]  ;;  %v1306_v10 = vpop.permute.xlu1 %1305  ;;  %v1834_v6 = vld [vmem:[#allocation3 + $0x40] sm:$0xff] }
 0x160   : > { %1747 = vst [vmem:[#allocation3 + $0x28] sm:$0xf0] %v1735_v42  ;;  %v1846_v16 = vld [vmem:[#allocation3 + $0xc8] sm:$0xf]  ;;  %v1338_v22 = vrot.slane %v1326_v28, 4  ;;  %vm4409_vm6 = vcmp.ge.s32.totalorder %v1031_v5, 1  ;;  %v1712_v31 = vsel %vm5234_vm14, %v4096_v54, %v1704_v0  ;;  %v1713_v33 = vsel %vm5241_vm11, %v1704_v0, %v4070_v43  ;;  %vm5243_vm14 = vmmov %vm5242_vm2 }
 0x161   : > { %v1864_v49 = vpack.c.bf16 %v1846_v16, %v1846_v16  ;;  %v5239_v56 = vmov 0  ;;  %1600 = vst [vmem:[#allocation3 + $0x8] sm:$0xf0] %v1588_v26  ;;  %1601 = vst [vmem:[#allocation3 + $0x78] sm:$0xf0] %v1589_v34  ;;  %v1855_v39 = vpack.c.bf16 %v1837_v57, %v1831_v8  ;;  %v1863_v61 = vpack.c.bf16 %v1845_v46, %v1845_v46  ;;  %1902 = vmatprep.subr.bf16.mxu0 %v1856_v63  ;;  %v1833_v41 = vld [vmem:[#allocation3 + $0x70] sm:$0xff] }
 0x162   : > { %v5240_v56 = vsel %vm4409_vm6, 4294967295, %v5239_v56  ;;  %1351 = vst [vmem:[#allocation3] sm:$0xf0] %v1339_v58  ;;  %1350 = vst [vmem:[#allocation3 + $0xb0] sm:$0xf0] %v1338_v22  ;;  %v1725_v35 = vsel %vm4336_vm0, %v1713_v33, 0.0  ;;  %v1316_v40 = vsel %vm5154_vm9, %v4105_v59, %v1306_v10  ;;  %v1317_v12 = vsel %vm5154_vm9, %v1306_v10, %v4119_v7  ;;  %v1642_v55 = vpop.permute.xlu0 %1641 }
 0x163   : > { %v1736_v5 = vrot.slane %v1712_v31, 4  ;;  %3539 = vmatprep.subr.msk.bf16.mxu1 %vm5242_vm2, %v1864_v49  ;;  %v1737_v54 = vrot.slane %v1725_v35, 4  ;;  %v1328_v43 = vsel %vm4275_vm15, %v1316_v40, 0.0  ;;  %v1341_v50 = vrot.slane %v1317_v12, 4  ;;  %1903 = vmatpush1.bf16.msra.mxu0 %v1855_v39  ;;  %vm5151_vm11 = vmand %vm4336_vm0, %vm4409_vm6  ;;  %v1839_v59 = vld [vmem:[#allocation3 + $0x38] sm:$0xff]  ;;  %v1644_v48 = vpop.permute.xlu1 %1643  ;;  %v1826_v34 = vld [vmem:[#allocation3 + $0x48] sm:$0xff] }
 0x164   : > { %v1879_v42 = vsel %vm5243_vm14, %v1863_v61, 0  ;;  %v1340_v45 = vrot.slane %v1328_v43, 4  ;;  %vm5244_vm2 = vcmask 924672   ;;  %v1096_v57 = vand.u32 255, %v4284_v20  ;;  %v1848_v16 = vld [vmem:[#allocation3 + $0x20] sm:$0xf] }
 0x165   : > { %1748 = vst [vmem:[#allocation3 + $0x90] sm:$0xf0] %v1736_v5  ;;  %1942 = vmatpush1.bf16.msra.mxu1 %v1879_v42  ;;  %1749 = vst [vmem:[#allocation3 + $0xa0] sm:$0xf0] %v1737_v54  ;;  %v1650_v47 = vsel %vm5244_vm2, %v4107_v60, %v1642_v55  ;;  %v1857_v26 = vpack.c.bf16 %v1839_v59, %v1833_v41  ;;  %v1847_v22 = vld [vmem:[#allocation3 + $0xe0] sm:$0xf] }
 0x166   : > { %1353 = vst [vmem:[#allocation3 + $0x18] sm:$0xf0] %v1341_v50  ;;  %1352 = vst [vmem:[#allocation3 + $0xd8] sm:$0xf0] %v1340_v45  ;;  %v1662_v23 = vsel %vm4393_vm8, %v1650_v47, 0.0  ;;  %v1458_v28 = vpop.permute.xlu0 %1457  ;;  %v1825_v49 = vld [vmem:[#allocation3 + $0x30] sm:$0xff]  ;;  %v1865_v35 = vpack.c.bf16 %v1847_v22, %v1847_v22 }
 0x167   : > { %v1840_v52 = vld [vmem:[#allocation3 + $0x28] sm:$0xff]  ;;  %vm5245_vm14 = vmmov %vm5244_vm2  ;;  %1668 = vst [vmem:[#allocation3 + $0x90] sm:$0xf] %v1662_v23  ;;  %vm5246_vm2 = vcmask 7168   ;;  %v1460_v0 = vpop.permute.xlu1 %1459  ;;  %v5248_v10 = vmov 0  ;;  %v1827_v59 = vld [vmem:[#allocation3 + $0x80] sm:$0xff] }
 0x168   : > { %v1651_v53 = vsel %vm5245_vm14, %v1642_v55, %v1644_v48  ;;  %v1858_v51 = vpack.c.bf16 %v1840_v52, %v1834_v6  ;;  %v1466_v63 = vsel %vm5246_vm2, %v4165_v32, %v1458_v28  ;;  %vm5247_vm14 = vmmov %vm5246_vm2  ;;  %v1866_v32 = vpack.c.bf16 %v1848_v16, %v1848_v16  ;;  %v1818_v12 = vld [vmem:[%s5100_s11] sm:$0xf]  ;;  %v1828_v43 = vld [vmem:[#allocation3 + $0x88] sm:$0xff] }
 0x169   : > { %v1663_v60 = vsel %vm5151_vm11, %v1651_v53, 0.0  ;;  %v1820_v58 = vld [vmem:[#allocation3] sm:$0xff]  ;;  %v1819_v8 = vld [vmem:[#allocation3 + $0xb0] sm:$0xff]  ;;  %v1478_v46 = vsel %vm4393_vm8, %v1466_v63, 0.0  ;;  %v1467_v31 = vsel %vm5247_vm14, %v1458_v28, %v1460_v0  ;;  %vm4447_vm11 = vcmp.ge.s32.totalorder %v1096_v57, 16  ;;  %v1836_v53 = vld [vmem:[#allocation3 + $0x78] sm:$0xff] }
 0x16a   : > { %1669 = vst [vmem:[#allocation3 + $0xa0] sm:$0xf] %v1663_v60  ;;  %1943 = vmatprep.subr.bf16.mxu1 %v1858_v51  ;;  %v1850_v20 = vpack.c.bf16 %v1826_v34, %v1820_v58  ;;  %v1849_v33 = vpack.c.bf16 %v1825_v49, %v1819_v8  ;;  %v5249_v10 = vsel %vm4447_vm11, 4294967295, %v5248_v10  ;;  %v1490_v39 = vrot.slane %v1478_v46, 4  ;;  %v1310_v40 = vpop.permute.xlu0 %1309  ;;  %vm5155_vm2 = vmand %vm4447_vm11, %vm4393_vm8  ;;  %v1835_v28 = vld [vmem:[#allocation3 + $0x8] sm:$0xff] }
 0x16b   : > { %1944 = vmatpush1.bf16.msra.mxu1 %v1857_v26  ;;  %v1479_v61 = vsel %vm4409_vm6, %v1467_v31, 0.0  ;;  %v1318_v50 = vsel %vm5154_vm9, %v4119_v7, %v1310_v40  ;;  %v1312_v42 = vpop.permute.xlu1 %1311  ;;  %vm5250_vm14 = vcmask 1041408   ;;  %vm5251_vm15 = vcmask 293888  }
 0x16c   : > { %1904 = vmatprep.subr.bf16.mxu0 %v1850_v20  ;;  %v1491_v5 = vrot.slane %v1479_v61, 4  ;;  %1502 = vst [vmem:[#allocation3 + $0xe8] sm:$0xf0] %v1490_v39  ;;  %v1330_v47 = vsel %vm4447_vm11, %v1318_v50, 0.0  ;;  %v1319_v48 = vsel %vm5154_vm9, %v1310_v40, %v1312_v42  ;;  %v1885_v23 = vsel %vm5250_vm14, %v1865_v35, 0  ;;  %v4497_v35 = vld [vmem:[#allocation4 + $0x38] sm:$0xff] }
 0x16d   : > { %1905 = vmatpush1.bf16.msra.mxu0 %v1849_v33  ;;  %v1822_v54 = vld [vmem:[#allocation3 + $0x18] sm:$0xff]  ;;  %v1342_v52 = vrot.slane %v1330_v47, 4  ;;  %v1343_v7 = vrot.slane %v1319_v48, 4  ;;  %vm5252_vm9 = vcmask 138240   ;;  %2213 = vrot.lane.b32.xlu1 %v4497_v35, %s5258_s8  ;;  %v4512_v40 = vsub.s32 0, %v3972_v11 }
 0x16e   : > { %3541 = vmatprep.subr.msk.bf16.mxu0 %vm5250_vm14, %v1866_v32  ;;  %v1852_v45 = vpack.c.bf16 %v1828_v43, %v1822_v54  ;;  %v1821_v55 = vld [vmem:[#allocation3 + $0xd8] sm:$0xff]  ;;  %1503 = vst [vmem:[#allocation3 + $0xb8] sm:$0xf0] %v1491_v5  ;;  %v1841_v41 = vld [vmem:[#allocation3 + $0x90] sm:$0xff]  ;;  %v1248_v57 = vpop.permute.xlu0 %1247  ;;  %vm5254_vm14 = vcmask 293888   ;;  %2161 = vrot.lane.b32.xlu0 %v4497_v35, %s5259_s4  ;;  %v4503_v5 = vld [vmem:[#allocation4 + $0x30] sm:$0xff] }
 0x16f   : > { %v1851_v6 = vpack.c.bf16 %v1827_v59, %v1821_v55  ;;  %1354 = vst [vmem:[#allocation3 + $0x50] sm:$0xf0] %v1342_v52  ;;  %1355 = vst [vmem:[#allocation3 + $0x68] sm:$0xf0] %v1343_v7  ;;  %v1256_v26 = vsel %vm5252_vm9, %v4206_v21, %v1248_v57  ;;  %v1250_v34 = vpop.permute.xlu1 %1249  ;;  %v1859_v22 = vpack.c.bf16 %v1841_v41, %v1835_v28  ;;  %v2020_v54 = vld [vmem:[%s5106_s17] sm:$0x3] }
 0x170   : > { %3538 = vmatmul.mubr.msk.bf16.vlgmr.msra.gmra.mxu0 %vm5251_vm15, %v1818_v12  ;;  %1945 = vmatprep.subr.bf16.mxu1 %v1852_v45  ;;  %v1268_v58 = vsel %vm5155_vm2, %v1256_v26, 0.0  ;;  %vm5253_vm15 = vmmov %vm5252_vm9  ;;  %v4518_v43 = vsub.s32 1, %v3972_v11  ;;  %v2025_v50 = vrot.slane %v2020_v54, %v4512_v40  ;;  %v2065_v55 = vld [vmem:[%s5106_s17] sm:$0x3]  ;;  %vm5269_vm8 = vcmask 1043456  }
 0x171   : > { %v1842_v51 = vld [vmem:[#allocation3 + $0xa0] sm:$0xff]  ;;  %1946 = vmatpush1.bf16.msra.mxu1 %v1851_v6  ;;  %1983 = vmatpush1.bf16.msra.mxu0 %v1885_v23  ;;  %v1257_v16 = vsel %vm5253_vm15, %v1248_v57, %v1250_v34  ;;  %1274 = vst [vmem:[#allocation3 + $0x50] sm:$0xf] %v1268_v58  ;;  %vm5156_vm9 = vmand %vm4447_vm11, %vm4364_vm3  ;;  %vm5255_vm15 = vcmask 121856   ;;  %v2070_v23 = vrot.slane %v2065_v55, %v4512_v40 }
 0x172   : > { %v1860_v60 = vpack.c.bf16 %v1842_v51, %v1836_v53  ;;  %2004 = vmatprep.mubr.bf16.mxu0 %v3813_v3  ;;  %v1269_v63 = vsel %vm4409_vm6, %v1257_v16, 0.0  ;;  %v1396_v21 = vpop.permute.xlu0 %1395  ;;  %2549 = vrot.lane.b32.xlu1 %v4503_v5, %s5180_s25  ;;  %v2029_v47 = vrot.slane %v2020_v54, %v4518_v43  ;;  %vm5272_vm6 = vcmask 924672  }
 0x173   : > { %1275 = vst [vmem:[#allocation3 + $0x68] sm:$0xf] %v1269_v63  ;;  %v1404_v0 = vsel %vm5255_vm15, %v4227_v29, %v1396_v21  ;;  %v1398_v20 = vpop.permute.xlu1 %1397 }
 0x174   : > { %1984 = vmatprep.subr.bf16.mxu0 %v1860_v60  ;;  %3540 = vmatmul.mubr.msk.bf16.vlgmr.msra.gmra.mxu1 %vm5254_vm14, %v1818_v12  ;;  %v1416_v8 = vsel %vm5156_vm9, %v1404_v0, 0.0  ;;  %vm5256_vm14 = vmmov %vm5255_vm15  ;;  %vm5257_vm15 = vcmask 293888   ;;  %v2074_v60 = vrot.slane %v2065_v55, %v4518_v43 }
 0x175   : > { %1985 = vmatpush1.bf16.msra.mxu0 %v1859_v22  ;;  %2715 = vmatprep.mubr.bf16.mxu1 %v3813_v3  ;;  %v1405_v49 = vsel %vm5256_vm14, %v1396_v21, %v1398_v20  ;;  %1422 = vst [vmem:[#allocation3 + $0xe8] sm:$0xf] %v1416_v8 }
 0x176   : > { %v1417_v46 = vsel %vm4311_vm5, %v1405_v49, 0.0  ;;  %2445 = vrot.lane.b32.xlu1 %v4503_v5, %s5260_s1 }
 0x177   : > { %1423 = vst [vmem:[#allocation3 + $0xb8] sm:$0xf] %v1417_v46 }
 0x178   : > { %v1823_v32 = vld [vmem:[#allocation3 + $0x50] sm:$0xff] }
 0x17a   : > { %v1824_v33 = vld [vmem:[#allocation3 + $0x68] sm:$0xff]  ;;  %2497 = vrot.lane.b32.xlu1 %v4503_v5, %s5182_s30 }
 0x17c   : > { %v1829_v31 = vld [vmem:[#allocation3 + $0xe8] sm:$0xff] }
 0x17d   : > { %v1853_v29 = vpack.c.bf16 %v1829_v31, %v1823_v32 }
 0x17e   : > { %v1830_v39 = vld [vmem:[#allocation3 + $0xb8] sm:$0xff] }
 0x17f   : > { %v1854_v61 = vpack.c.bf16 %v1830_v39, %v1824_v33  ;;  %v2016_v42 = vpop.permute.xlu0 %2015 }
 0x181   : > { %1986 = vmatprep.subr.bf16.mxu0 %v1854_v61 }
 0x182   : > { %1987 = vmatpush1.bf16.msra.mxu0 %v1853_v29 }
 0x183   : > { %v2083_v63 = vpop.permute.xlu0 %2082 }
 0x185   : > { %3542 = vmatmul.mubr.msk.bf16.vlgmr.msra.gmra.mxu0 %vm5257_vm15, %v1818_v12  ;;  %v2061_v12 = vpop.permute.xlu1 %2060 }
 0x186   : > { %2756 = vmatprep.mubr.bf16.mxu0 %v3813_v3 }
 0x189   : > { %v2038_v6 = vpop.permute.xlu1 %2037 }
 0x18d   : > { %v2053_v46 = vpop.permute.xlu1 %2052 }
 0x230   : > { %v1924_v45 = vpop.f32.mrf.mxu0 }
 0x231   : > { %v2018_v59 = vmul.f32 %v2016_v42, %v1924_v45  ;;  %v2097_v45 = vpop.permute.xlu0 %2096 }
 0x232   : > { %v1926_v48 = vpop.f32.mrf.mxu0 }
 0x233   : > { %v2032_v52 = vadd.f32 %v2025_v50, %v2018_v59  ;;  %v2019_v7 = vmul.f32 %v2016_v42, %v1926_v48 }
 0x234   : > { %v1928_v53 = vpop.f32.mrf.mxu0  ;;  %v1965_v11 = vpop.f32.mrf.mxu1 }
 0x235   : > { %v2033_v51 = vadd.f32 %v2029_v47, %v2019_v7  ;;  %v2040_v41 = vadd.f32 %v2038_v6, %v2032_v52  ;;  %v2063_v57 = vmul.f32 %v2061_v12, %v1965_v11  ;;  %v2105_v52 = vpop.permute.xlu1 %2104  ;;  %v2109_v7 = vld [vmem:[%s5106_s17] sm:$0x3] }
 0x236   : > { %v1929_v26 = vpop.f32.mrf.mxu0  ;;  %v1967_v34 = vpop.f32.mrf.mxu1  ;;  %v2114_v53 = vrot.slane %v2109_v7, %v4512_v40 }
 0x237   : > { %v2041_v28 = vadd.f32 %v2038_v6, %v2033_v51  ;;  %v2044_v58 = vmul.f32 0.2, %v2040_v41  ;;  %v2077_v16 = vadd.f32 %v2070_v23, %v2063_v57  ;;  %v2064_v22 = vmul.f32 %v2061_v12, %v1967_v34 }
 0x238   : > { %v1969_v21 = vpop.f32.mrf.mxu1  ;;  %vm2042_vm14 = vcmp.ge.f32.partialorder %v2040_v41, 0.0 }
 0x239   : > { %v2045_v0 = vmul.f32 0.2, %v2041_v28  ;;  %v2085_v20 = vadd.f32 %v2083_v63, %v2077_v16  ;;  %v2078_v8 = vadd.f32 %v2074_v60, %v2064_v22  ;;  %vm2043_vm15 = vcmp.ge.f32.partialorder %v2041_v28, 0.0  ;;  %v2127_v34 = vpop.permute.xlu1 %2126 }
 0x23a   : > { %v1970_v49 = vpop.f32.mrf.mxu1  ;;  %v2046_v31 = vsel %vm2042_vm14, %v2040_v41, %v2044_v58  ;;  %v2118_v60 = vrot.slane %v2109_v7, %v4518_v43  ;;  %vm5262_vm14 = vcmask 908288  }
 0x23b   : > { %v2086_v33 = vadd.f32 %v2083_v63, %v2078_v8  ;;  %v2047_v39 = vsel %vm2043_vm15, %v2041_v28, %v2045_v0  ;;  %v2048_v61 = vmul.f32 1.4142135, %v2046_v31  ;;  %vm2087_vm2 = vcmp.ge.f32.partialorder %v2085_v20, 0.0  ;;  %v2141_v31 = vpop.permute.xlu0 %2140  ;;  %vm5263_vm15 = vmmov %vm5262_vm14 }
 0x23c   : > { %v2049_v32 = vmul.f32 1.4142135, %v2047_v39  ;;  %v2089_v29 = vmul.f32 0.2, %v2085_v20 }
 0x23d   : > { %v4527_v54 = vmul.f32 %v2053_v46, %v2048_v61  ;;  %vm2088_vm9 = vcmp.ge.f32.partialorder %v2086_v33, 0.0  ;;  %v2090_v12 = vmul.f32 0.2, %v2086_v33 }
 0x23e   : > { %v4529_v50 = vmul.f32 %v2053_v46, %v2049_v32  ;;  %v2091_v42 = vsel %vm2087_vm2, %v2085_v20, %v2089_v29 }
 0x23f   : > { %v2092_v55 = vsel %vm2088_vm9, %v2086_v33, %v2090_v12  ;;  %v2093_v59 = vmul.f32 1.4142135, %v2091_v42 }
 0x240   : > { %v2094_v47 = vmul.f32 1.4142135, %v2092_v55  ;;  %v3681_v51 = vpack.i.bf16 %v4529_v50, %v4527_v54 }
 0x241   : > { %v4531_v48 = vmul.f32 %v2097_v45, %v2093_v59  ;;  %v2912_v59 = vld [vmem:[%s5105_s16] sm:$0x7] }
 0x242   : > { %v4533_v6 = vmul.f32 %v2097_v45, %v2094_v47  ;;  %v3148_v47 = vld [vmem:[%s5105_s16] sm:$0x7] }
 0x243   : > { %v3676_v23 = vpack.i.bf16 %v4531_v48, %v4497_v35  ;;  %v3691_v41 = vpack.i.bf16 %v4531_v48, %v4529_v50 }
 0x244   : > { %v3686_v16 = vpack.i.bf16 %v4533_v6, %v4531_v48  ;;  %v3701_v22 = vpack.i.bf16 %v4533_v6, %v4527_v54 }
 0x245   : > { %3677 = vrot.lane.b32.xlu1 %v3676_v23, %s5261_s2  ;;  %3672 = vrot.lane.b32.xlu0 %v3676_v23, %s3821_s28  ;;  %v2006_v11 = vpop.f32.mrf.mxu0 }
 0x246   : > { %v2107_v57 = vmul.f32 %v2105_v52, %v2006_v11 }
 0x247   : > { %v2008_v26 = vpop.f32.mrf.mxu0 }
 0x248   : > { %v2121_v35 = vadd.f32 %v2114_v53, %v2107_v57  ;;  %v2108_v28 = vmul.f32 %v2105_v52, %v2008_v26  ;;  %v4612_v52 = vpop.permute.xlu1 %2213 }
 0x249   : > { %3682 = vrot.lane.b32.xlu1 %v3681_v51, %s5180_s25  ;;  %3692 = vrot.lane.b32.xlu0 %v3691_v41, %s5260_s1  ;;  %v2010_v58 = vpop.f32.mrf.mxu0 }
 0x24a   : > { %v2122_v63 = vadd.f32 %v2118_v60, %v2108_v28  ;;  %v2129_v21 = vadd.f32 %v2127_v34, %v2121_v35 }
 0x24b   : > { %v2011_v0 = vpop.f32.mrf.mxu0 }
 0x24c   : > { %v2130_v20 = vadd.f32 %v2127_v34, %v2122_v63  ;;  %v2133_v8 = vmul.f32 0.2, %v2129_v21  ;;  %vm2131_vm2 = vcmp.ge.f32.partialorder %v2129_v21, 0.0  ;;  %v4614_v7 = vpop.permute.xlu1 %2549 }
 0x24d   : > { %3687 = vrot.lane.b32.xlu1 %v3686_v16, %s5180_s25  ;;  %3702 = vrot.lane.b32.xlu0 %v3701_v22, %s5260_s1 }
 0x24e   : > { %v2134_v49 = vmul.f32 0.2, %v2130_v20  ;;  %vm2132_vm9 = vcmp.ge.f32.partialorder %v2130_v20, 0.0  ;;  %v2135_v46 = vsel %vm2131_vm2, %v2129_v21, %v2133_v8  ;;  %vm5264_vm2 = vmand %vm4140_vm4, %vm4231_vm12 }
 0x24f   : > { %v2137_v33 = vmul.f32 1.4142135, %v2135_v46 }
 0x250   : > { %v2136_v39 = vsel %vm2132_vm9, %v2130_v20, %v2134_v49  ;;  %v4616_v23 = vpop.permute.xlu1 %2445 }
 0x251   : > { %3697 = vrot.lane.b32.xlu1 %v3691_v41, %s5182_s30  ;;  %3712 = vrot.lane.b32.xlu0 %v3691_v41, %s5181_s7  ;;  %v2138_v61 = vmul.f32 1.4142135, %v2136_v39  ;;  %v4558_v32 = vmul.f32 %v2141_v31, %v2137_v33 }
 0x253   : > { %v4560_v29 = vmul.f32 %v2141_v31, %v2138_v61  ;;  %v3741_v12 = vpack.i.bf16 %v4558_v32, %v4533_v6 }
 0x254   : > { %v4618_v53 = vpop.permute.xlu1 %2497 }
 0x255   : > { %3707 = vrot.lane.b32.xlu1 %v3701_v22, %s5182_s30  ;;  %3722 = vrot.lane.b32.xlu0 %v3681_v51, %s3821_s28  ;;  %v3751_v42 = vpack.i.bf16 %v4560_v29, %v4558_v32 }
 0x259   : > { %3717 = vrot.lane.b32.xlu1 %v3701_v22, %s5181_s7  ;;  %3732 = vrot.lane.b32.xlu0 %v3681_v51, %s5259_s4 }
 0x25d   : > { %3727 = vrot.lane.b32.xlu1 %v3681_v51, %s5261_s2  ;;  %3742 = vrot.lane.b32.xlu0 %v3741_v12, %s3821_s28 }
 0x261   : > { %3737 = vrot.lane.b32.xlu1 %v3681_v51, %s5258_s8  ;;  %3747 = vrot.lane.b32.xlu0 %v3741_v12, %s5261_s2 }
 0x265   : > { %2393 = vrot.lane.b32.xlu1 %v4503_v5, %s5181_s7  ;;  %3752 = vrot.lane.b32.xlu0 %v3751_v42, %s5180_s25  ;;  %v2827_v5 = vld [vmem:[%s5104_s15] sm:$0xff] }
 0x269   : > { %2277 = vrot.lane.b32.xlu1 %v4560_v29, %s3821_s28  ;;  %3757 = vrot.lane.b32.xlu0 %v3751_v42, %s5260_s1  ;;  %s949_s1 = scalar_lea.vmem %s5098_s9, %s3975_s3 }
 0x26a   : > { %v1163_v45 = vld [vmem:[%s949_s1] sm:$0xff] }
 0x26d   : > { %2329 = vrot.lane.b32.xlu1 %v4560_v29, %s5261_s2  ;;  %3762 = vrot.lane.b32.xlu0 %v3751_v42, %s5182_s30  ;;  %s5369_s2 = sld [smem:[#allocation10_spill]] }
 0x271   : > { %3767 = vrot.lane.b32.xlu0 %v3751_v42, %s5181_s7  ;;  %3782 = vrot.lane.b32.xlu1 %v3751_v42, %s5259_s4  ;;  %s5016_s7 = sshll.u32 %s5374_s26, 4 }
 0x272   : > { %s963_s0 = scalar_lea.vmem %s5109_s20, %s5016_s7 }
 0x273   : > { %s923_s25 = scalar_lea.vmem %s5369_s2, %s3975_s3 }
 0x275   : > { %3772 = vrot.lane.b32.xlu0 %v3686_v16, %s5259_s4  ;;  %3787 = vrot.lane.b32.xlu1 %v3751_v42, %s5258_s8  ;;  %s953_s4 = scalar_lea.vmem %s5099_s10, %s3975_s3 }
 0x276   : > { %v1164_v55 = vld [vmem:[%s953_s4] sm:$0xff]  ;;  %s968_s4 = scalar_lea.vmem %s5110_s21, %s5016_s7 }
 0x279   : > { %3777 = vrot.lane.b32.xlu0 %v3686_v16, %s5258_s8  ;;  %2830 = vperm.xlu1 %3669, %v2827_v5   ;;  %s958_s8 = scalar_lea.vmem %s5108_s19, %s5016_s7 }
 0x27d   : > { %2808 = vperm.xlu0 %3791, %v1163_v45   ;;  %3792 = vset.pattern.permute.xlu1 %v3811_v1 }
 0x27e   : > { %2928 = vperm.xlu1 %3792, %v1163_v45  }
 0x281   : > { %3793 = vset.pattern.permute.xlu0 %v3812_v2 }
 0x282   : > { %3794 = vset.pattern.permute.xlu1 %v3813_v3  ;;  %3046 = vperm.xlu0 %3793, %v1163_v45  }
 0x283   : > { %2848 = vperm.xlu1 %3794, %v1164_v55  }
 0x286   : > { %3795 = vset.pattern.permute.xlu0 %v3813_v3 }
 0x287   : > { %3068 = vperm.xlu0 %3795, %v2827_v5   ;;  %2950 = vperm.xlu1 %3794, %v2827_v5  }
 0x28b   : > { %2915 = vperm.xlu0 %3795, %v2912_v59   ;;  %3796 = vset.pattern.permute.xlu1 %v3811_v1  ;;  %v4620_v1 = vpop.permute.xlu0 %2161 }
 0x28c   : > { %2967 = vperm.xlu1 %3796, %v1164_v55  }
 0x28f   : > { %3151 = vperm.xlu0 %3795, %v3148_v47  }
 0x290   : > { %3797 = vset.pattern.permute.xlu1 %v3812_v2 }
 0x291   : > { %3085 = vperm.xlu1 %3797, %v1164_v55  }
 0x295   : > { %3798 = vset.pattern.permute.xlu1 %v3813_v3 }
 0x2b7   : > { %v4622_v11 = vpop.permute.xlu1 %3677  ;;  %v4624_v51 = vpop.permute.xlu0 %3672 }
 0x2bb   : > { %v3683_v41 = vpop.permute.xlu1 %3682  ;;  %v4626_v57 = vpop.permute.xlu0 %3692 }
 0x2bc   : > { %v3685_v2 = vunpack.i.h.bf16 %v3683_v41  ;;  %v3684_v60 = vunpack.i.l.bf16 %v3683_v41  ;;  %v3695_v16 = vunpack.i.h.bf16 %v4626_v57  ;;  %v3694_v22 = vunpack.i.l.bf16 %v4626_v57 }
 0x2be   : > { %v2551_v26 = vsel %vm5262_vm14, %v3684_v60, %v3685_v2  ;;  %vm5265_vm14 = vcmask 924672  }
 0x2bf   : > { %v4629_v34 = vpop.permute.xlu1 %3687  ;;  %v4631_v35 = vpop.permute.xlu0 %3702  ;;  %v2563_v58 = vsel %vm4219_vm7, %v2551_v26, 0.0  ;;  %v2448_v61 = vsel %vm5265_vm14, %v3694_v22, %v3695_v16  ;;  %vm5270_vm14 = vmmov %vm5269_vm8 }
 0x2c0   : > { %v3689_v28 = vunpack.i.l.bf16 %v4629_v34  ;;  %v2654_v8 = vpack.c.bf16 %v2563_v58, %v2563_v58  ;;  %v3704_v12 = vunpack.i.l.bf16 %v4631_v35 }
 0x2c2   : > { %v2552_v63 = vsel %vm5263_vm15, %v3685_v2, %v3689_v28  ;;  %vm5266_vm15 = vcmask 916480   ;;  %v2666_v55 = vsel %vm5270_vm14, %v2654_v8, 0  ;;  %v2447_v19 = vsel %vm5272_vm6, %v3704_v12, %v3694_v22 }
 0x2c3   : > { %v2564_v21 = vsel %vm5264_vm2, %v2552_v63, 0.0  ;;  %v4646_v0 = vpop.permute.xlu1 %3697  ;;  %v4648_v20 = vpop.permute.xlu0 %3712  ;;  %vm5267_vm2 = vnez %v5190_v18 }
 0x2c4   : > { %v3700_v49 = vunpack.i.h.bf16 %v4646_v0  ;;  %v3699_v46 = vunpack.i.l.bf16 %v4646_v0  ;;  %v3715_v31 = vunpack.i.h.bf16 %v4648_v20  ;;  %v3714_v33 = vunpack.i.l.bf16 %v4648_v20  ;;  %vm5268_vm9 = vmand %vm4140_vm4, %vm5267_vm2 }
 0x2c5   : > { %v2655_v39 = vpack.c.bf16 %v2564_v21, %v2564_v21  ;;  %vm3569_vm11 = vmpackc.low %vm4140_vm4, %vm5268_vm9  ;;  %vm5273_vm4 = vcmask 916480   ;;  %vm3822_vm9 = vmmov 1  }
 0x2c6   : > { %v2500_v42 = vsel %vm5266_vm15, %v3699_v46, %v3700_v49  ;;  %vm5271_vm15 = vcmask 1039360   ;;  %vm3575_vm14 = vmpackc.low %vm4231_vm12, %vm3822_vm9 }
 0x2c7   : > { %v3570_v5 = vpack.c.bf16 %v2500_v42, %v2448_v61  ;;  %3543 = vmatprep.subr.msk.bf16.mxu1 %vm5269_vm8, %v2655_v39  ;;  %v4669_v45 = vpop.permute.xlu1 %3707  ;;  %v4672_v59 = vpop.permute.xlu0 %3722  ;;  %v2396_v41 = vsel %vm5271_vm15, %v3714_v33, %v3715_v31  ;;  %vm5274_vm8 = vnez %v5194_v27  ;;  %vm5275_vm6 = vmmov %vm5271_vm15  ;;  %v3674_v39 = vunpack.i.l.bf16 %v4624_v51 }
 0x2c8   : > { %v3709_v47 = vunpack.i.l.bf16 %v4669_v45  ;;  %2690 = vmatpush1.bf16.msra.mxu1 %v2666_v55  ;;  %vm3572_vm3 = vmpackc.low %vm3822_vm9, %vm5274_vm8  ;;  %v3576_v63 = vpack.c.bf16 %v2396_v41, %v4529_v50  ;;  %v3725_v21 = vunpack.i.h.bf16 %v4672_v59  ;;  %v3724_v8 = vunpack.i.l.bf16 %v4672_v59 }
 0x2c9   : > { %3571 = vmatprep.subr.msk.bf16.mxu1 %vm3569_vm11, %v3570_v5  ;;  %vm3578_vm11 = vmpackc.low %vm4219_vm7, %vm3822_vm9  ;;  %v3679_v42 = vunpack.i.l.bf16 %v4622_v11  ;;  %v3690_v5 = vunpack.i.h.bf16 %v4629_v34 }
 0x2ca   : > { %v2499_v2 = vsel %vm5273_vm4, %v3709_v47, %v3699_v46  ;;  %vm5278_vm4 = vcmask 7168  }
 0x2cb   : > { %v3573_v60 = vpack.c.bf16 %v2499_v2, %v2447_v19  ;;  %v4683_v26 = vpop.permute.xlu1 %3717  ;;  %v4685_v58 = vpop.permute.xlu0 %3732 }
 0x2cc   : > { %v3719_v22 = vunpack.i.l.bf16 %v4683_v26  ;;  %v3734_v19 = vunpack.i.l.bf16 %v4685_v58 }
 0x2cd   : > { %3574 = vmatpush1.bf16.msk.msra.mxu1 %vm3572_vm3, %v3573_v60  ;;  %vm5276_vm3 = vcmask 121856  }
 0x2ce   : > { %v2395_v46 = vsel %vm5275_vm6, %v3719_v22, %v3714_v33  ;;  %3577 = vmatprep.subr.msk.bf16.mxu1 %vm3575_vm14, %v3576_v63  ;;  %v2279_v47 = vsel %vm5276_vm3, %v3674_v39, %v3724_v8  ;;  %vm5277_vm15 = vmmov %vm5276_vm3 }
 0x2cf   : > { %v3579_v61 = vpack.c.bf16 %v2395_v46, %v4527_v54  ;;  %v4700_v12 = vpop.permute.xlu1 %3727  ;;  %v4702_v50 = vpop.permute.xlu0 %3742  ;;  %v2280_v41 = vsel %vm5277_vm15, %v3724_v8, %v3725_v21  ;;  %v3735_v54 = vunpack.i.h.bf16 %v4685_v58  ;;  %vm5279_vm14 = vmmov %vm5278_vm4  ;;  %vm5281_vm15 = vcmask 908288  }
 0x2d0   : > { %v3730_v55 = vunpack.i.h.bf16 %v4700_v12  ;;  %v3729_v33 = vunpack.i.l.bf16 %v4700_v12  ;;  %vm3581_vm6 = vmpackc.low %vm5267_vm2, %vm4231_vm12  ;;  %v2553_v30 = vsel %vm5281_vm15, %v3689_v28, %v3690_v5 }
 0x2d1   : > { %3580 = vmatpush1.bf16.msk.msra.mxu1 %vm3578_vm11, %v3579_v61  ;;  %vm5280_vm11 = vmand %vm4198_vm13, %vm4219_vm7  ;;  %vm5282_vm7 = vcmask 138240  }
 0x2d2   : > { %v2331_v2 = vsel %vm5278_vm4, %v3679_v42, %v3729_v33  ;;  %v2332_v60 = vsel %vm5279_vm14, %v3729_v33, %v3730_v55  ;;  %vm3584_vm3 = vmpackc.low %vm5274_vm8, %vm5280_vm11  ;;  %v2175_v25 = vsel %vm5282_vm7, %v4620_v1, %v3734_v19  ;;  %vm5284_vm4 = vcmask 130048  }
 0x2d3   : > { %v3582_v63 = vpack.c.bf16 %v2332_v60, %v2280_v41  ;;  %v3585_v22 = vpack.c.bf16 %v2331_v2, %v2279_v47  ;;  %v4729_v8 = vpop.permute.xlu1 %3737  ;;  %v4731_v46 = vpop.permute.xlu0 %3747  ;;  %vm5283_vm12 = vmmov %vm5282_vm7  ;;  %v2565_v41 = vsel %vm4125_vm1, %v2553_v30, 0.0  ;;  %v4769_v60 = vld [vmem:[%s5101_s12] sm:$0xf] }
 0x2d4   : > { %v3740_v39 = vunpack.i.h.bf16 %v4729_v8  ;;  %v3739_v61 = vunpack.i.l.bf16 %v4729_v8  ;;  %v2176_v42 = vsel %vm5283_vm12, %v3734_v19, %v3735_v54  ;;  %vm5285_vm14 = vmmov %vm5284_vm4  ;;  %vm5291_vm12 = vnez %v5188_v15 }
 0x2d5   : > { %3583 = vmatprep.subr.msk.bf16.mxu1 %vm3581_vm6, %v3582_v63  ;;  %vm3587_vm11 = vmpackc.low %vm3822_vm9, %vm5267_vm2  ;;  %vm5165_vm2 = vcmask 588800   ;;  %v2656_v63 = vpack.c.bf16 %v2565_v41, %v2565_v41  ;;  %v3750_v20 = vunpack.i.h.bf16 %v4731_v46 }
 0x2d6   : > { %v2227_v33 = vsel %vm5284_vm4, %v4612_v52, %v3739_v61  ;;  %v2228_v34 = vsel %vm5285_vm14, %v3739_v61, %v3740_v39  ;;  %3586 = vmatpush1.bf16.msk.msra.mxu1 %vm3584_vm3, %v3585_v22  ;;  %vm5286_vm6 = vmand %vm4198_vm13, %vm5274_vm8  ;;  %vm5287_vm3 = vcmask 908288   ;;  %v3710_v22 = vunpack.i.h.bf16 %v4669_v45 }
 0x2d7   : > { %vm3590_vm15 = vmpackc.low %vm4198_vm13, %vm5286_vm6  ;;  %v3588_v1 = vpack.c.bf16 %v2228_v34, %v2176_v42  ;;  %v3591_v28 = vpack.c.bf16 %v2227_v33, %v2175_v25  ;;  %v4758_v52 = vpop.permute.xlu1 %2393  ;;  %v3753_v47 = vpop.permute.xlu0 %3752  ;;  %vm5293_vm14 = vnez %v5231_v44  ;;  %v3720_v45 = vunpack.i.h.bf16 %v4683_v26 }
 0x2d8   : > { %v3755_v19 = vunpack.i.h.bf16 %v3753_v47  ;;  %v3754_v18 = vunpack.i.l.bf16 %v3753_v47  ;;  %vm5288_vm7 = vmmov %vm5287_vm3  ;;  %v3680_v47 = vunpack.i.h.bf16 %v4622_v11  ;;  %v3705_v26 = vunpack.i.h.bf16 %v4631_v35 }
 0x2d9   : > { %3589 = vmatprep.subr.msk.bf16.mxu1 %vm3587_vm11, %v3588_v1  ;;  %vm5289_vm8 = vmmov %vm5287_vm3  ;;  %vm5294_vm11 = vcmask 1043456  }
 0x2da   : > { %v2556_v2 = vsel %vm5287_vm3, %v3755_v19, %v4614_v7  ;;  %v2554_v27 = vsel %vm5288_vm7, %v3690_v5, %v3754_v18  ;;  %v2555_v17 = vsel %vm5289_vm8, %v3754_v18, %v3755_v19  ;;  %3592 = vmatpush1.bf16.msk.msra.mxu1 %vm3590_vm15, %v3591_v28  ;;  %vm5290_vm13 = vmand %vm4336_vm0, %vm4311_vm5  ;;  %v3675_v19 = vunpack.i.h.bf16 %v4624_v51 }
 0x2db   : > { %v2568_v30 = vsel %vm5290_vm13, %v2556_v2, 0.0  ;;  %vm5292_vm4 = vmand %vm4178_vm10, %vm5291_vm12  ;;  %v4782_v5 = vpop.permute.xlu1 %2277  ;;  %v3758_v61 = vpop.permute.xlu0 %3757  ;;  %v2567_v25 = vsel %vm5293_vm14, %v2555_v17, 0.0  ;;  %vm5296_vm15 = vcmask 916480   ;;  %vm5299_vm8 = vcmask 1039360  }
 0x2dc   : > { %v2566_v7 = vsel %vm5292_vm4, %v2554_v27, 0.0  ;;  %v3760_v33 = vunpack.i.h.bf16 %v3758_v61  ;;  %v3759_v34 = vunpack.i.l.bf16 %v3758_v61  ;;  %v2659_v1 = vpack.c.bf16 %v2568_v30, %v2568_v30  ;;  %vm5295_vm6 = vmmov %vm5294_vm11 }
 0x2dd   : > { %v2657_v42 = vpack.c.bf16 %v2566_v7, %v2566_v7  ;;  %3544 = vmatmul.mubr.msk.bf16.vlgmr.msra.gmra.mxu1 %vm5165_vm2, %v4769_v60  ;;  %v2658_v28 = vpack.c.bf16 %v2567_v25, %v2567_v25  ;;  %v2672_v41 = vsel %vm5295_vm6, %v2656_v63, 0  ;;  %v2501_v18 = vsel %vm5296_vm15, %v3700_v49, %v3710_v22  ;;  %vm5297_vm3 = vmmov %vm5295_vm6 }
 0x2de   : > { %2797 = vmatprep.mubr.bf16.mxu1 %v3813_v3  ;;  %3547 = vmatprep.subr.msk.bf16.mxu1 %vm5297_vm3, %v2659_v1  ;;  %vm5298_vm7 = vmmov %vm5297_vm3  ;;  %v4803_v17 = vsel %vm5299_vm8, %v3715_v31, %v3720_v45  ;;  %v3744_v63 = vunpack.i.l.bf16 %v4702_v50  ;;  %vm5300_vm13 = vnez %v5196_v36  ;;  %v3749_v49 = vunpack.i.l.bf16 %v4731_v46 }
 0x2df   : > { %3545 = vmatprep.subr.msk.bf16.mxu0 %vm5294_vm11, %v2657_v42  ;;  %v2330_v2 = vpop.permute.xlu1 %2329  ;;  %v3763_v27 = vpop.permute.xlu0 %3762  ;;  %v2678_v11 = vsel %vm5298_vm7, %v2658_v28, 0  ;;  %vm5301_vm4 = vmand %vm4178_vm10, %vm5300_vm13  ;;  %vm5304_vm6 = vcmask 924672   ;;  %vm5306_vm3 = vnez %v5240_v56 }
 0x2e0   : > { %2731 = vmatpush1.bf16.msra.mxu0 %v2672_v41  ;;  %v3765_v30 = vunpack.i.h.bf16 %v3763_v27  ;;  %v3764_v35 = vunpack.i.l.bf16 %v3763_v27  ;;  %2772 = vmatpush1.bf16.msra.mxu1 %v2678_v11  ;;  %vm4813_vm11 = vmpackc.low %vm4178_vm10, %vm5301_vm4  ;;  %v2452_v31 = vsel %vm5304_vm6, %v3760_v33, %v4616_v23  ;;  %vm5311_vm4 = vcmask 916480  }
 0x2e1   : > { %vm5305_vm15 = vmmov %vm5304_vm6  ;;  %v3603_v27 = vpack.c.bf16 %v4803_v17, %v4531_v48 }
 0x2e2   : > { %v2450_v7 = vsel %vm5305_vm15, %v3705_v26, %v3759_v34  ;;  %vm5307_vm7 = vmand %vm4336_vm0, %vm5306_vm3  ;;  %v2504_v46 = vsel %vm5311_vm4, %v3765_v30, %v4618_v53  ;;  %vm5314_vm15 = vnez %v5200_v9 }
 0x2e3   : > { %vm4829_vm10 = vmpackc.low %vm4336_vm0, %vm5307_vm7  ;;  %v3783_v28 = vpop.permute.xlu1 %3782  ;;  %v3768_v53 = vpop.permute.xlu0 %3767 }
 0x2e4   : > { %vm5310_vm8 = vmmov %vm5304_vm6  ;;  %v3770_v11 = vunpack.i.h.bf16 %v3768_v53  ;;  %v3769_v57 = vunpack.i.l.bf16 %v3768_v53 }
 0x2e5   : > { %v2451_v61 = vsel %vm5310_vm8, %v3759_v34, %v3760_v33  ;;  %vm5312_vm2 = vmmov %vm5311_vm4  ;;  %v3618_v33 = vpack.c.bf16 %v2504_v46, %v2452_v31  ;;  %vm5323_vm4 = vcmask 7168  }
 0x2e6   : > { %v2502_v23 = vsel %vm5312_vm2, %v3710_v22, %v3764_v35  ;;  %vm5313_vm6 = vmmov %vm5312_vm2  ;;  %vm5318_vm2 = vnez %v5238_v4 }
 0x2e7   : > { %v2503_v25 = vsel %vm5313_vm6, %v3764_v35, %v3765_v30  ;;  %vm4841_vm13 = vmpackc.low %vm3822_vm9, %vm5314_vm15  ;;  %v3594_v1 = vpack.c.bf16 %v2502_v23, %v2450_v7  ;;  %v3745_v30 = vunpack.i.h.bf16 %v4702_v50  ;;  %vm5324_vm6 = vcmask 121856   ;;  %3619 = vmatprep.subr.msk.bf16.mxu1 %vm4829_vm10, %v3618_v33  ;;  %v3788_v7 = vpop.permute.xlu1 %3787  ;;  %v3773_v37 = vpop.permute.xlu0 %3772 }
 0x2e8   : > { %vm5317_vm0 = vmmov %vm5310_vm8  ;;  %v3621_v34 = vpack.c.bf16 %v2503_v25, %v2451_v61  ;;  %v2282_v48 = vsel %vm5324_vm6, %v3675_v19, %v3744_v63  ;;  %vm5329_vm15 = vcmask 1039360   ;;  %v3775_v23 = vunpack.i.h.bf16 %v3773_v37  ;;  %v2845_v61 = vld [vmem:[%s5102_s13] sm:$0x3] }
 0x2e9   : > { %v2449_v24 = vsel %vm5317_vm0, %v3695_v16, %v3705_v26  ;;  %vm4851_vm7 = vmpackc.low %vm3822_vm9, %vm5318_vm2  ;;  %v2333_v26 = vsel %vm5323_vm4, %v3730_v55, %v3680_v47  ;;  %3595 = vmatprep.subr.msk.bf16.mxu0 %vm4813_vm11, %v3594_v1  ;;  %v2400_v17 = vsel %vm5329_vm15, %v3770_v11, %v4758_v52  ;;  %v3774_v25 = vunpack.i.l.bf16 %v3773_v37 }
 0x2ea   : > { %v3597_v41 = vpack.c.bf16 %v2501_v18, %v2449_v24  ;;  %vm4860_vm8 = vmpackc.low %vm5291_vm12, %vm3822_vm9  ;;  %3622 = vmatpush1.bf16.msk.msra.mxu1 %vm4851_vm7, %v3621_v34 }
 0x2eb   : > { %vm5325_vm0 = vmmov %vm5323_vm4  ;;  %v3778_v14 = vpop.permute.xlu0 %3777 }
 0x2ec   : > { %v2334_v18 = vsel %vm5325_vm0, %v3680_v47, %v3749_v49  ;;  %vm4881_vm4 = vmpackc.low %vm4311_vm5, %vm3822_vm9  ;;  %3598 = vmatpush1.bf16.msk.msra.mxu0 %vm4841_vm13, %v3597_v41  ;;  %v3780_v50 = vunpack.i.h.bf16 %v3778_v14 }
 0x2ed   : > { %vm5328_vm2 = vmmov %vm5325_vm0  ;;  %v3606_v46 = vpack.c.bf16 %v2334_v18, %v2282_v48 }
 0x2ee   : > { %v2335_v55 = vsel %vm5328_vm2, %v3749_v49, %v3750_v20  ;;  %vm5330_vm6 = vmmov %vm5329_vm15  ;;  %v3624_v49 = vpack.c.bf16 %v2400_v17, %v4560_v29  ;;  %vm5337_vm15 = vcmask 121856  }
 0x2ef   : > { %v2398_v47 = vsel %vm5330_vm6, %v3720_v45, %v3769_v57  ;;  %vm5331_vm0 = vmmov %vm5330_vm6  ;;  %v2284_v29 = vsel %vm5337_vm15, %v3745_v30, %v4782_v5  ;;  %vm5341_vm15 = vnez %v5200_v9  ;;  %v2813_v9 = vld [vmem:[%s5107_s18] sm:$0x3] }
 0x2f0   : > { %v2399_v35 = vsel %vm5331_vm0, %v3769_v57, %v3770_v11  ;;  %vm4895_vm11 = vmpackc.low %vm4125_vm1, %vm3822_vm9  ;;  %v3600_v52 = vpack.c.bf16 %v2398_v47, %v4533_v6  ;;  %v3789_v6 = vunpack.i.l.bf16 %v3788_v7  ;;  %3625 = vmatprep.subr.msk.bf16.mxu1 %vm4881_vm4, %v3624_v49  ;;  %vm5339_vm0 = vnez %v5208_v62 }
 0x2f1   : > { %vm5334_vm10 = vmmov %vm5328_vm2  ;;  %v3627_v45 = vpack.c.bf16 %v2399_v35, %v4558_v32  ;;  %vm5338_vm2 = vnez %v5196_v36  ;;  %v3785_v32 = vunpack.i.h.bf16 %v3783_v28  ;;  %v3030_v36 = vld [vmem:[%s5105_s16] sm:$0x7] }
 0x2f2   : > { %v2336_v31 = vsel %vm5334_vm10, %v3750_v20, %v2330_v2  ;;  %vm4908_vm13 = vmpackc.low %vm5293_vm14, %vm3822_vm9  ;;  %v3790_v2 = vunpack.i.h.bf16 %v3788_v7  ;;  %v3784_v20 = vunpack.i.l.bf16 %v3783_v28  ;;  %3601 = vmatprep.subr.msk.bf16.mxu0 %vm4860_vm8, %v3600_v52  ;;  %3033 = vperm.xlu1 %3798, %v3030_v36  }
 0x2f3   : > { %vm3605_vm7 = vmpackc.low %vm5338_vm2, %vm5291_vm12  ;;  %v3630_v5 = vpack.c.bf16 %v2336_v31, %v2284_v29  ;;  %3604 = vmatpush1.bf16.msk.msra.mxu0 %vm4895_vm11, %v3603_v27  ;;  %vm5346_vm11 = vcmask 130048   ;;  %3628 = vmatpush1.bf16.msk.msra.mxu1 %vm4908_vm13, %v3627_v45  ;;  %vm5352_vm13 = vcmask 138240   ;;  %v3051_v29 = vld [vmem:[%s5107_s18] sm:$0x3] }
 0x2f4   : > { %vm3629_vm6 = vmpackc.low %vm5306_vm3, %vm4311_vm5  ;;  %vm5344_vm5 = vcmask 121856   ;;  %v2232_v1 = vsel %vm5346_vm11, %v3789_v6, %v3790_v2  ;;  %3607 = vmatprep.subr.msk.bf16.mxu0 %vm3605_vm7, %v3606_v46  ;;  %v2180_v15 = vsel %vm5352_vm13, %v3784_v20, %v3785_v32  ;;  %v2933_v46 = vld [vmem:[%s5107_s18] sm:$0x3] }
 0x2f5   : > { %vm5340_vm10 = vmand %vm5339_vm0, %vm4125_vm1  ;;  %v2281_v38 = vsel %vm5344_vm5, %v3725_v21, %v3675_v19  ;;  %vm5347_vm1 = vnez %v5249_v10  ;;  %v3779_v19 = vunpack.i.l.bf16 %v3778_v14  ;;  %3631 = vmatprep.subr.msk.bf16.mxu1 %vm3629_vm6, %v3630_v5  ;;  %v3636_v34 = vpack.c.bf16 %v2232_v1, %v2180_v15 }
 0x2f6   : > { %vm4935_vm8 = vmpackc.low %vm5341_vm15, %vm5340_vm10  ;;  %v3609_v59 = vpack.c.bf16 %v2333_v26, %v2281_v38  ;;  %v2818_v10 = vrot.slane %v2813_v9, %v4512_v40  ;;  %v2942_v42 = vrot.slane %v2933_v46, %v4518_v43  ;;  %v3060_v1 = vrot.slane %v3051_v29, %v4518_v43 }
 0x2f7   : > { %vm5345_vm4 = vmmov %vm5344_vm5  ;;  %vm5349_vm5 = vnez %v5238_v4  ;;  %v2831_v4 = vpop.permute.xlu1 %2830 }
 0x2f8   : > { %v2283_v24 = vsel %vm5345_vm4, %v3744_v63, %v3745_v30  ;;  %vm5348_vm10 = vmand %vm5347_vm1, %vm5293_vm14  ;;  %3610 = vmatpush1.bf16.msk.msra.mxu0 %vm4935_vm8, %v3609_v59  ;;  %v2809_v62 = vpop.permute.xlu0 %2808 }
 0x2f9   : > { %vm4962_vm4 = vmpackc.low %vm5349_vm5, %vm5348_vm10  ;;  %v3633_v21 = vpack.c.bf16 %v2335_v55, %v2283_v24  ;;  %vm5356_vm10 = vcmask 130048  }
 0x2fa   : > { %vm5353_vm12 = vmmov %vm5352_vm13  ;;  %v2231_v28 = vsel %vm5356_vm10, %v3780_v50, %v3789_v6  ;;  %v2938_v6 = vrot.slane %v2933_v46, %v4512_v40 }
 0x2fb   : > { %v2179_v63 = vsel %vm5353_vm12, %v3775_v23, %v3784_v20  ;;  %vm5354_vm7 = vmmov %vm5353_vm12  ;;  %3634 = vmatpush1.bf16.msk.msra.mxu1 %vm4962_vm4, %v3633_v21  ;;  %v2929_v57 = vpop.permute.xlu1 %2928 }
 0x2fc   : > { %v2177_v44 = vsel %vm5354_vm7, %v3735_v54, %v3774_v25  ;;  %vm5355_vm14 = vmmov %vm5354_vm7  ;;  %v3639_v54 = vpack.c.bf16 %v2231_v28, %v2179_v63 }
 0x2fd   : > { %v2178_v33 = vsel %vm5355_vm14, %v3774_v25, %v3775_v23  ;;  %vm3635_vm11 = vmpackc.low %vm3822_vm9, %vm5306_vm3  ;;  %vm2855_vm14 = vcmask 64512   ;;  %v3047_v2 = vpop.permute.xlu0 %3046  ;;  %v3056_v23 = vrot.slane %v3051_v29, %v4512_v40 }
 0x2fe   : > { %vm5357_vm6 = vmmov %vm5356_vm10  ;;  %3637 = vmatprep.subr.msk.bf16.mxu1 %vm3635_vm11, %v3636_v34 }
 0x2ff   : > { %v2229_v53 = vsel %vm5357_vm6, %v3740_v39, %v3779_v19  ;;  %vm5358_vm13 = vmmov %vm5357_vm6  ;;  %v2849_v55 = vpop.permute.xlu1 %2848 }
 0x300   : > { %v2230_v22 = vsel %vm5358_vm13, %v3779_v19, %v3780_v50  ;;  %vm3611_vm12 = vmpackc.low %vm3822_vm9, %vm5338_vm2  ;;  %v3615_v58 = vpack.c.bf16 %v2229_v53, %v2177_v44  ;;  %vm5361_vm2 = vcmask 588800  }
 0x301   : > { %vm5359_vm3 = vmand %vm5339_vm0, %vm5341_vm15  ;;  %v3612_v56 = vpack.c.bf16 %v2230_v22, %v2178_v33 }
 0x302   : > { %vm3614_vm7 = vmpackc.low %vm5339_vm0, %vm5359_vm3  ;;  %v3069_v15 = vpop.permute.xlu0 %3068 }
 0x303   : > { %vm5360_vm8 = vmand %vm5347_vm1, %vm5349_vm5  ;;  %3613 = vmatprep.subr.msk.bf16.mxu0 %vm3611_vm12, %v3612_v56  ;;  %vm5363_vm5 = vcmask 1043456   ;;  %v2951_v32 = vpop.permute.xlu1 %2950 }
 0x304   : > { %vm3638_vm9 = vmpackc.low %vm5347_vm1, %vm5360_vm8  ;;  %3616 = vmatpush1.bf16.msk.msra.mxu0 %vm3614_vm7, %v3615_v58 }
 0x305   : > { %3640 = vmatpush1.bf16.msk.msra.mxu1 %vm3638_vm9, %v3639_v54  ;;  %vm5362_vm0 = vmmov %vm5361_vm2 }
 0x306   : > { %vm5364_vm4 = vmmov %vm5363_vm5 }
 0x307   : > { %3546 = vmatmul.mubr.msk.bf16.vlgmr.msra.gmra.mxu0 %vm5361_vm2, %v4769_v60  ;;  %vm5365_vm12 = vmmov %vm5364_vm4 }
 0x308   : > { %3548 = vmatmul.mubr.msk.bf16.vlgmr.msra.gmra.mxu1 %vm5362_vm0, %v4769_v60  ;;  %2897 = vmatprep.mubr.bf16.mxu0 %v3813_v3  ;;  %v2822_v60 = vrot.slane %v2813_v9, %v4518_v43  ;;  %vm5366_vm3 = vmmov %vm5364_vm4 }
 0x309   : > { %3133 = vmatprep.mubr.bf16.mxu1 %v3813_v3  ;;  %vm5367_vm7 = vmmov %vm5366_vm3 }
 0x30a   : > { %vm5368_vm8 = vmmov %vm5366_vm3 }
 0x39d   : > { %v2717_v8 = vpop.f32.mrf.mxu1 }
 0x39e   : > { %v2811_v39 = vmul.f32 %v2809_v62, %v2717_v8 }
 0x39f   : > { %v2719_v41 = vpop.f32.mrf.mxu1 }
 0x3a0   : > { %v2825_v27 = vadd.f32 %v2818_v10, %v2811_v39  ;;  %v2812_v11 = vmul.f32 %v2809_v62, %v2719_v41 }
 0x3a1   : > { %v2721_v16 = vpop.f32.mrf.mxu1 }
 0x3a2   : > { %v2833_v26 = vadd.f32 %v2831_v4, %v2825_v27  ;;  %v2826_v30 = vadd.f32 %v2822_v60, %v2812_v11 }
 0x3a3   : > { %v2722_v48 = vpop.f32.mrf.mxu1 }
 0x3a4   : > { %v2834_v18 = vadd.f32 %v2831_v4, %v2826_v30  ;;  %vm2835_vm15 = vcmp.ge.f32.partialorder %v2833_v26, 0.0  ;;  %v2837_v12 = vmul.f32 0.2, %v2833_v26 }
 0x3a6   : > { %vm2836_vm1 = vcmp.ge.f32.partialorder %v2834_v18, 0.0  ;;  %v2838_v17 = vmul.f32 0.2, %v2834_v18  ;;  %v2839_v47 = vsel %vm2835_vm15, %v2833_v26, %v2837_v12 }
 0x3a7   : > { %v2841_v35 = vmul.f32 1.4142135, %v2839_v47  ;;  %v2965_v47 = vld [vmem:[%s5102_s13] sm:$0x3] }
 0x3a8   : > { %v2840_v0 = vsel %vm2836_vm1, %v2834_v18, %v2838_v17 }
 0x3a9   : > { %v2842_v31 = vmul.f32 1.4142135, %v2840_v0  ;;  %2843 = vst [vmem:[%s958_s8] sm:$0xff] %v2841_v35  ;;  %v2851_v49 = vmul.f32 %v2849_v55, %v2841_v35  ;;  %v3083_v35 = vld [vmem:[%s5102_s13] sm:$0x3] }
 0x3ab   : > { %2844 = vst [vmem:[%s958_s8 + $0x8] sm:$0xff] %v2842_v31  ;;  %v2852_v52 = vmul.f32 %v2849_v55, %v2842_v31  ;;  %v2853_v45 = vpack.c.bf16 %v2851_v49, %v2851_v49  ;;  %v2906_v49 = vld [vmem:[%s923_s25] sm:$0x77]  ;;  %s978_s25 = scalar_lea.vmem %s5112_s23, %s3975_s3 }
 0x3ad   : > { %v2854_v7 = vpack.c.bf16 %v2852_v52, %v2852_v52  ;;  %v2860_v37 = vsel %vm5364_vm4, %v2853_v45, 0  ;;  %v2916_v45 = vpop.permute.xlu0 %2915 }
 0x3af   : > { %3549 = vmatprep.subr.msk.bf16.mxu0 %vm5363_vm5, %v2854_v7 }
 0x3b0   : > { %2880 = vmatpush1.bf16.msra.mxu0 %v2860_v37  ;;  %v2923_v37 = vrot.slane %v2916_v45, %v3980_v13 }
 0x3b3   : > { %3550 = vmatmul.mubr.msk.bf16.vlgmr.msra.gmra.mxu0 %vm2855_vm14, %v2845_v61 }
 0x3b4   : > { %3015 = vmatprep.mubr.bf16.mxu0 %v3813_v3  ;;  %v2968_v3 = vpop.permute.xlu1 %2967 }
 0x3b8   : > { %v3086_v62 = vpop.permute.xlu1 %3085 }
 0x3c7   : > { %v2758_v20 = vpop.f32.mrf.mxu0 }
 0x3c8   : > { %v2931_v25 = vmul.f32 %v2929_v57, %v2758_v20  ;;  %v2799_v5 = vpop.f32.mrf.mxu1 }
 0x3c9   : > { %v3049_v38 = vmul.f32 %v3047_v2, %v2799_v5  ;;  %v2760_v24 = vpop.f32.mrf.mxu0 }
 0x3ca   : > { %v2945_v14 = vadd.f32 %v2938_v6, %v2931_v25  ;;  %v2932_v51 = vmul.f32 %v2929_v57, %v2760_v24  ;;  %v2801_v59 = vpop.f32.mrf.mxu1  ;;  %v3034_v6 = vpop.permute.xlu1 %3033 }
 0x3cb   : > { %v3063_v21 = vadd.f32 %v3056_v23, %v3049_v38  ;;  %v3050_v50 = vmul.f32 %v3047_v2, %v2801_v59  ;;  %v2762_v19 = vpop.f32.mrf.mxu0  ;;  %v3152_v25 = vpop.permute.xlu0 %3151  ;;  %v3142_v38 = vld [vmem:[%s933_s5] sm:$0x77]  ;;  %v3041_v24 = vrot.slane %v3034_v6, %v3980_v13 }
 0x3cc   : > { %v2953_v63 = vadd.f32 %v2951_v32, %v2945_v14  ;;  %v2946_v44 = vadd.f32 %v2942_v42, %v2932_v51  ;;  %v2803_v40 = vpop.f32.mrf.mxu1 }
 0x3cd   : > { %v3071_v33 = vadd.f32 %v3069_v15, %v3063_v21  ;;  %v3064_v34 = vadd.f32 %v3060_v1, %v3050_v50  ;;  %v2763_v28 = vpop.f32.mrf.mxu0  ;;  %v3159_v21 = vrot.slane %v3152_v25, %v3980_v13 }
 0x3ce   : > { %v2954_v53 = vadd.f32 %v2951_v32, %v2946_v44  ;;  %v2804_v22 = vpop.f32.mrf.mxu1  ;;  %vm2955_vm11 = vcmp.ge.f32.partialorder %v2953_v63, 0.0  ;;  %v2957_v43 = vmul.f32 0.2, %v2953_v63 }
 0x3cf   : > { %v3072_v56 = vadd.f32 %v3069_v15, %v3064_v34  ;;  %vm3073_vm10 = vcmp.ge.f32.partialorder %v3071_v33, 0.0  ;;  %v3075_v58 = vmul.f32 0.2, %v3071_v33 }
 0x3d0   : > { %vm2956_vm6 = vcmp.ge.f32.partialorder %v2954_v53, 0.0  ;;  %v2958_v54 = vmul.f32 0.2, %v2954_v53  ;;  %v2959_v36 = vsel %vm2955_vm11, %v2953_v63, %v2957_v43 }
 0x3d1   : > { %v2961_v9 = vmul.f32 1.4142135, %v2959_v36  ;;  %vm3074_vm13 = vcmp.ge.f32.partialorder %v3072_v56, 0.0  ;;  %v3076_v4 = vmul.f32 0.2, %v3072_v56  ;;  %v3077_v10 = vsel %vm3073_vm10, %v3071_v33, %v3075_v58 }
 0x3d2   : > { %v2960_v8 = vsel %vm2956_vm6, %v2954_v53, %v2958_v54  ;;  %v3079_v39 = vmul.f32 1.4142135, %v3077_v10 }
 0x3d3   : > { %v2962_v60 = vmul.f32 1.4142135, %v2960_v8  ;;  %2963 = vst [vmem:[%s963_s0] sm:$0xff] %v2961_v9  ;;  %v2970_v41 = vmul.f32 %v2968_v3, %v2961_v9  ;;  %v3078_v27 = vsel %vm3074_vm13, %v3072_v56, %v3076_v4 }
 0x3d4   : > { %v3080_v11 = vmul.f32 1.4142135, %v3078_v27  ;;  %3081 = vst [vmem:[%s968_s4] sm:$0xff] %v3079_v39  ;;  %v3088_v57 = vmul.f32 %v3086_v62, %v3079_v39 }
 0x3d5   : > { %2964 = vst [vmem:[%s963_s0 + $0x8] sm:$0xff] %v2962_v60  ;;  %v2971_v16 = vmul.f32 %v2968_v3, %v2962_v60  ;;  %v2972_v26 = vpack.c.bf16 %v2970_v41, %v2970_v41  ;;  %s973_s0 = scalar_lea.vmem %s5111_s22, %s3975_s3 }
 0x3d6   : > { %3082 = vst [vmem:[%s968_s4 + $0x8] sm:$0xff] %v3080_v11  ;;  %v3089_v30 = vmul.f32 %v3086_v62, %v3080_v11  ;;  %v3090_v48 = vpack.c.bf16 %v3088_v57, %v3088_v57  ;;  %s5370_s4 = sld [smem:[#allocation11_spill]] }
 0x3d7   : > { %v2973_v18 = vpack.c.bf16 %v2971_v16, %v2971_v16  ;;  %v2978_v55 = vsel %vm5366_vm3, %v2972_v26, 0 }
 0x3d8   : > { %v3091_v12 = vpack.c.bf16 %v3089_v30, %v3089_v30  ;;  %v3096_v17 = vsel %vm5368_vm8, %v3090_v48, 0 }
 0x3d9   : > { %3551 = vmatprep.subr.msk.bf16.mxu0 %vm5365_vm12, %v2973_v18 }
 0x3da   : > { %3553 = vmatprep.subr.msk.bf16.mxu1 %vm5367_vm7, %v3091_v12  ;;  %2998 = vmatpush1.bf16.msra.mxu0 %v2978_v55 }
 0x3db   : > { %3116 = vmatpush1.bf16.msra.mxu1 %v3096_v17 }
 0x3dc   : > { %s928_s7 = scalar_lea.vmem %s5370_s4, %s3975_s3 }
 0x3dd   : > { %3552 = vmatmul.mubr.msk.bf16.vlgmr.msra.gmra.mxu0 %vm2855_vm14, %v2965_v47  ;;  %v3024_v23 = vld [vmem:[%s928_s7] sm:$0x77] }
 0x3de   : > { %3554 = vmatmul.mubr.msk.bf16.vlgmr.msra.gmra.mxu1 %vm2855_vm14, %v3083_v35 }
 0x473   : > { %v2899_v0 = vpop.f32.mrf.mxu0 }
 0x475   : > { %v2901_v31 = vpop.f32.mrf.mxu0 }
 0x476   : > { %v2909_v52 = vcombine.low %v2899_v0, %v2901_v31 }
 0x477   : > { %v2903_v7 = vpop.f32.mrf.mxu0 }
 0x478   : > { %v2911_v61 = vadd.f32 %v2909_v52, %v2906_v49 }
 0x479   : > { %v2904_v46 = vpop.f32.mrf.mxu0 }
 0x47a   : > { %v2925_v29 = vadd.f32 %v2923_v37, %v2911_v61 }
 0x47c   : > { %2926 = vst [vmem:[%s973_s0] sm:$0x77] %v2925_v29  ;;  %s983_s0 = scalar_lea.vmem %s5113_s24, %s3975_s3 }
 0x49d   : > { %v3017_v2 = vpop.f32.mrf.mxu0 }
 0x49e   : > { %v3135_v32 = vpop.f32.mrf.mxu1 }
 0x49f   : > { %v3019_v20 = vpop.f32.mrf.mxu0 }
 0x4a0   : > { %v3027_v5 = vcombine.low %v3017_v2, %v3019_v20  ;;  %v3137_v42 = vpop.f32.mrf.mxu1 }
 0x4a1   : > { %v3145_v1 = vcombine.low %v3135_v32, %v3137_v42  ;;  %v3021_v14 = vpop.f32.mrf.mxu0 }
 0x4a2   : > { %v3029_v51 = vadd.f32 %v3027_v5, %v3024_v23  ;;  %v3139_v59 = vpop.f32.mrf.mxu1 }
 0x4a3   : > { %v3147_v50 = vadd.f32 %v3145_v1, %v3142_v38  ;;  %v3022_v19 = vpop.f32.mrf.mxu0 }
 0x4a4   : > { %v3140_v3 = vpop.f32.mrf.mxu1  ;;  %v3043_v15 = vadd.f32 %v3041_v24, %v3029_v51 }
 0x4a5   : > { %v3161_v63 = vadd.f32 %v3159_v21, %v3147_v50 }
 0x4a6   : > { %3044 = vst [vmem:[%s978_s25] sm:$0x77] %v3043_v15 }
 0x4a7   : > { %3162 = vst [vmem:[%s983_s0] sm:$0x77] %v3161_v63 }
 0x4a8 PF: > { %s5372_s1 = sld [smem:[#allocation6_spill]] }
 0x4ae   : > { %s35_s5 = sadd.s32 1, %s5372_s1  }
 0x4af   : > { %p32_p4 = scmp.ge.s32.totalorder %s35_s5, 4  }
 0x4b1   :  { %34 = sbr.rel (!%p32_p4) target bundleno = 10 (0xa), region = 216 }

</bundles_post_ra>
